<compile_context>
chip_gen: v5e
topology: v5e:2x2
jax: 0.10.0
libtpu: 0.0.40
codegen_flags: <defaults>
</compile_context>

<pallas_src>
import jax
import jax.numpy as jnp
from jax.experimental import pallas as pl
from jax.experimental.pallas import tpu as pltpu

IN_DIM = 28 * 28                  # 784
N1, N2, N3 = 300, 100, 10         # logical feature widths
N1P, N2P, N3P = 384, 128, 128     # lane-padded widths (multiples of 128)


def _round_up(n, m):
    return ((n + m - 1) // m) * m


def _sigmoid_f32(x):
    # exp -> EUP; approx reciprocal -> EUP as well, keeping VALU slots free.
    return pl.reciprocal(1.0 + jnp.exp(-x), approx=True)


def lenet_byan_kernel(x_ref, w1_ref, b1_ref, w2_ref, b2_ref, w3_ref, b3_ref, o_ref):
    # x arrives in caller dtype (f32 or bf16); cast to bf16 for the MXU here instead
    # of a separate host-side pad/cast staging pass over the whole input.
    x = x_ref[...].astype(jnp.bfloat16)                               # (TB, 784)
    h1 = jnp.dot(x, w1_ref[...], preferred_element_type=jnp.float32) + b1_ref[...]
    h1 = _sigmoid_f32(h1).astype(jnp.bfloat16)                        # (TB, 384)
    h2 = jnp.dot(h1, w2_ref[...], preferred_element_type=jnp.float32) + b2_ref[...]
    h2 = _sigmoid_f32(h2).astype(jnp.bfloat16)                        # (TB, 128)
    o = jnp.dot(h2, w3_ref[...], preferred_element_type=jnp.float32) + b3_ref[...]
    o_ref[...] = o.astype(o_ref.dtype)                                # (TB, 128) bf16


def _num_tensorcores():
    # v7x packs 2 TensorCores per chip; v5e/v6e have 1.  Detection failure -> 1 (safe).
    try:
        kind = jax.devices()[0].device_kind.lower()
    except Exception:
        return 1
    return 2 if "v7" in kind else 1


def lenet_byan_forward(x, padded_params, *, tb=2048):
    """x: any shape reshapeable to (-1, 784), e.g. (B, 1, 28, 28); f32 or bf16."""
    w1, b1, w2, b2, w3, b3 = padded_params
    x2d = x.reshape(-1, IN_DIM)
    B = x2d.shape[0]

    # Batch tile: multiple of 16 sublanes (bf16 packing).
    B16 = _round_up(B, 16)
    TB = min(_round_up(tb, 16), B16)
    cores = _num_tensorcores()
    if cores > 1 and B16 >= 16 * cores:
        # Guarantee >=2 grid steps on multi-TensorCore chips (v7x) so the
        # "parallel" batch axis is actually sharded across cores.
        TB = min(TB, _round_up(pl.cdiv(B16, cores), 16))
    B_pad = _round_up(B, TB)

    # Only materialize a padded copy when the batch is ragged w.r.t. TB; otherwise
    # the kernel reads x directly from HBM (no extra host-side staging traffic).
    x_in = x2d if B_pad == B else jnp.pad(x2d, ((0, B_pad - B), (0, 0)))

    grid = (B_pad // TB,)

    def resident(shape):
        # Constant index map -> operand stays VMEM-resident across grid steps.
        # (pl.Buffered(1) here would shave ~0.75 MB more VMEM on v7x; kept at the
        #  default depth for portability across chip generations.)
        return pl.BlockSpec(shape, lambda i: (0, 0))

    out = pl.pallas_call(
        lenet_byan_kernel,
        out_shape=jax.ShapeDtypeStruct((B_pad, N3P), jnp.bfloat16),
        grid=grid,
        in_specs=[
            pl.BlockSpec((TB, IN_DIM), lambda i: (i, 0)),   # x tile (pipelined)
            resident((IN_DIM, N1P)), resident((1, N1P)),    # fc1
            resident((N1P, N2P)),    resident((1, N2P)),    # fc2
            resident((N2P, N3P)),    resident((1, N3P)),    # fc3
        ],
        out_specs=pl.BlockSpec((TB, N3P), lambda i: (i, 0)),
        compiler_params=pltpu.CompilerParams(
            dimension_semantics=("parallel",),
            # Load-bearing on v5e (16 MiB default scoped VMEM); ~25 MiB used at TB=2048,
            # comfortably under v7x's 64 MiB physical VMEM as well.
            vmem_limit_bytes=48 * 1024 * 1024,
        ),
    )(x_in, w1, b1, w2, b2, w3, b3)
    return out[:B, :N3].astype(jnp.float32)


def init_params(key):
    """Unpadded f32 params matching Linear_Byan shapes; weights stored (in, out)."""
    ks = jax.random.split(key, 6)

    def linear(kw, kb, fan_in, fan_out):
        bound = 1.0 / jnp.sqrt(fan_in)
        w = jax.random.uniform(kw, (fan_in, fan_out), jnp.float32, -bound, bound)
        b = jax.random.uniform(kb, (1, fan_out), jnp.float32, -bound, bound)
        return w, b

    w1, b1 = linear(ks[0], ks[1], IN_DIM, N1)
    w2, b2 = linear(ks[2], ks[3], N1, N2)
    w3, b3 = linear(ks[4], ks[5], N2, N3)
    return (w1, b1, w2, b2, w3, b3)


def prepare_params(params):
    """Zero-pad feature dims to 128-lane multiples; weights -> bf16, biases -> f32.

    Zero-padded weight ROWS of w2/w3 guarantee the sigmoid(0)=0.5 values in the
    padded activation columns contribute nothing downstream.
    """
    w1, b1, w2, b2, w3, b3 = params

    def pad2(a, rows, cols, dtype):
        out = jnp.zeros((rows, cols), dtype)
        return out.at[: a.shape[0], : a.shape[1]].set(a.astype(dtype))

    return (
        pad2(w1, IN_DIM, N1P, jnp.bfloat16), pad2(b1, 1, N1P, jnp.float32),
        pad2(w2, N1P, N2P, jnp.bfloat16),    pad2(b2, 1, N2P, jnp.float32),
        pad2(w3, N2P, N3P, jnp.bfloat16),    pad2(b3, 1, N3P, jnp.float32),
    )


def reference_forward(x, params):
    w1, b1, w2, b2, w3, b3 = params
    x2d = x.reshape(-1, IN_DIM).astype(jnp.float32)
    h1 = jax.nn.sigmoid(x2d @ w1 + b1)
    h2 = jax.nn.sigmoid(h1 @ w2 + b2)
    return h2 @ w3 + b3


if __name__ == "__main__":
    key = jax.random.PRNGKey(0)
    k_params, k_x, k_x2 = jax.random.split(key, 3)
    params = init_params(k_params)
    padded = prepare_params(params)

    # Small MNIST-like batch: (B=2, C=1, H=28, W=28) NCHW, flattened inside.
    x = jax.random.normal(k_x, (2, 1, 28, 28), dtype=jnp.float32)
    out = jax.block_until_ready(lenet_byan_forward(x, padded))
    ref = reference_forward(x, params)
    assert out.shape == (2, 10)
    assert jnp.allclose(out, ref, atol=2e-2, rtol=2e-2), float(jnp.max(jnp.abs(out - ref)))

    # Exercise the multi-tile grid path (grid >= 2) and ragged-batch padding.
    x_big = jax.random.normal(k_x2, (160, 1, 28, 28), dtype=jnp.float32)
    out_big = jax.block_until_ready(lenet_byan_forward(x_big, padded, tb=64))
    ref_big = reference_forward(x_big, params)
    assert out_big.shape == (160, 10)
    assert jnp.allclose(out_big, ref_big, atol=2e-2, rtol=2e-2)

    print("KERNEL_OK")
</pallas_src>

<mosaic_0001>
module attributes {stable_mosaic.version = 11 : i64} {
  func.func @lenet_byan_kernel(%arg0: i32, %arg1: memref<16x784xf32, #tpu.memory_space<vmem>>, %arg2: memref<784x384xbf16, #tpu.memory_space<vmem>>, %arg3: memref<1x384xf32, #tpu.memory_space<vmem>>, %arg4: memref<384x128xbf16, #tpu.memory_space<vmem>>, %arg5: memref<1x128xf32, #tpu.memory_space<vmem>>, %arg6: memref<128x128xbf16, #tpu.memory_space<vmem>>, %arg7: memref<1x128xf32, #tpu.memory_space<vmem>>, %arg8: memref<16x128xbf16, #tpu.memory_space<vmem>>) attributes {dimension_semantics = [#tpu.dimension_semantics<parallel>], iteration_bounds = array<i64: 1>, scalar_prefetch = 0 : i64, scratch_operands = 0 : i64, tpu.core_type = #tpu.core_type<tc>, window_params = [{transform_indices = @transform_0, window_bounds = array<i64: 16, 784>}, {pipeline_mode = #tpu.pipeline_mode<synchronous>, transform_indices = @transform_1, window_bounds = array<i64: 784, 384>}, {pipeline_mode = #tpu.pipeline_mode<synchronous>, transform_indices = @transform_2, window_bounds = array<i64: 1, 384>}, {pipeline_mode = #tpu.pipeline_mode<synchronous>, transform_indices = @transform_3, window_bounds = array<i64: 384, 128>}, {pipeline_mode = #tpu.pipeline_mode<synchronous>, transform_indices = @transform_4, window_bounds = array<i64: 1, 128>}, {pipeline_mode = #tpu.pipeline_mode<synchronous>, transform_indices = @transform_5, window_bounds = array<i64: 128, 128>}, {pipeline_mode = #tpu.pipeline_mode<synchronous>, transform_indices = @transform_6, window_bounds = array<i64: 1, 128>}, {transform_indices = @transform_7, window_bounds = array<i64: 16, 128>}]} {
    %c0 = arith.constant 0 : index
    %c0_0 = arith.constant 0 : index
    %0 = vector.load %arg1[%c0, %c0_0] : memref<16x784xf32, #tpu.memory_space<vmem>>, vector<16x784xf32>
    %1 = arith.truncf %0 : vector<16x784xf32> to vector<16x784xbf16>
    %c0_1 = arith.constant 0 : index
    %c0_2 = arith.constant 0 : index
    %2 = vector.load %arg2[%c0_1, %c0_2] : memref<784x384xbf16, #tpu.memory_space<vmem>>, vector<784x384xbf16>
    %cst = arith.constant dense<0.000000e+00> : vector<16x384xf32>
    %3 = tpu.matmul %1, %2, %cst {dimension_numbers = #tpu.dot_dimension_numbers<[1], [0], [0], [1], [0, 0, 1, 1], [], []>} : vector<16x784xbf16>, vector<784x384xbf16>, vector<16x384xf32> -> vector<16x384xf32>
    %c0_3 = arith.constant 0 : index
    %c0_4 = arith.constant 0 : index
    %4 = vector.load %arg3[%c0_3, %c0_4] : memref<1x384xf32, #tpu.memory_space<vmem>>, vector<1x384xf32>
    %5 = vector.broadcast %4 : vector<1x384xf32> to vector<16x384xf32>
    %6 = arith.addf %3, %5 : vector<16x384xf32>
    %cst_5 = arith.constant 0.000000e+00 : f32
    %7 = vector.broadcast %cst_5 : f32 to vector<16x384xf32>
    %8 = arith.subf %7, %6 : vector<16x384xf32>
    %9 = math.exp %8 : vector<16x384xf32>
    %cst_6 = arith.constant 1.000000e+00 : f32
    %10 = vector.broadcast %cst_6 : f32 to vector<16x384xf32>
    %11 = arith.addf %10, %9 : vector<16x384xf32>
    %12 = tpu.reciprocal %11 {approx = true} : vector<16x384xf32> -> vector<16x384xf32>
    %13 = arith.truncf %12 : vector<16x384xf32> to vector<16x384xbf16>
    %c0_7 = arith.constant 0 : index
    %c0_8 = arith.constant 0 : index
    %14 = vector.load %arg4[%c0_7, %c0_8] : memref<384x128xbf16, #tpu.memory_space<vmem>>, vector<384x128xbf16>
    %cst_9 = arith.constant dense<0.000000e+00> : vector<16x128xf32>
    %15 = tpu.matmul %13, %14, %cst_9 {dimension_numbers = #tpu.dot_dimension_numbers<[1], [0], [0], [1], [0, 0, 1, 1], [], []>} : vector<16x384xbf16>, vector<384x128xbf16>, vector<16x128xf32> -> vector<16x128xf32>
    %c0_10 = arith.constant 0 : index
    %c0_11 = arith.constant 0 : index
    %16 = vector.load %arg5[%c0_10, %c0_11] : memref<1x128xf32, #tpu.memory_space<vmem>>, vector<1x128xf32>
    %17 = vector.broadcast %16 : vector<1x128xf32> to vector<16x128xf32>
    %18 = arith.addf %15, %17 : vector<16x128xf32>
    %cst_12 = arith.constant 0.000000e+00 : f32
    %19 = vector.broadcast %cst_12 : f32 to vector<16x128xf32>
    %20 = arith.subf %19, %18 : vector<16x128xf32>
    %21 = math.exp %20 : vector<16x128xf32>
    %cst_13 = arith.constant 1.000000e+00 : f32
    %22 = vector.broadcast %cst_13 : f32 to vector<16x128xf32>
    %23 = arith.addf %22, %21 : vector<16x128xf32>
    %24 = tpu.reciprocal %23 {approx = true} : vector<16x128xf32> -> vector<16x128xf32>
    %25 = arith.truncf %24 : vector<16x128xf32> to vector<16x128xbf16>
    %c0_14 = arith.constant 0 : index
    %c0_15 = arith.constant 0 : index
    %26 = vector.load %arg6[%c0_14, %c0_15] : memref<128x128xbf16, #tpu.memory_space<vmem>>, vector<128x128xbf16>
    %cst_16 = arith.constant dense<0.000000e+00> : vector<16x128xf32>
    %27 = tpu.matmul %25, %26, %cst_16 {dimension_numbers = #tpu.dot_dimension_numbers<[1], [0], [0], [1], [0, 0, 1, 1], [], []>} : vector<16x128xbf16>, vector<128x128xbf16>, vector<16x128xf32> -> vector<16x128xf32>
    %c0_17 = arith.constant 0 : index
    %c0_18 = arith.constant 0 : index
    %28 = vector.load %arg7[%c0_17, %c0_18] : memref<1x128xf32, #tpu.memory_space<vmem>>, vector<1x128xf32>
    %29 = vector.broadcast %28 : vector<1x128xf32> to vector<16x128xf32>
    %30 = arith.addf %27, %29 : vector<16x128xf32>
    %31 = arith.truncf %30 : vector<16x128xf32> to vector<16x128xbf16>
    %c0_19 = arith.constant 0 : index
    %c0_20 = arith.constant 0 : index
    %32 = vector.load %arg8[%c0_19, %c0_20] : memref<16x128xbf16, #tpu.memory_space<vmem>>, vector<16x128xbf16>
    tpu.vector_store %arg8[%c0_19, %c0_20], %31 {strides = array<i32>} : memref<16x128xbf16, #tpu.memory_space<vmem>>, vector<16x128xbf16>,
    return
  }
  func.func @transform_0(%arg0: i32) -> (i32, i32) {
    %c0_i32 = arith.constant 0 : i32
    %c0_i32_0 = arith.constant 0 : i32
    return %arg0, %c0_i32 : i32, i32
  }
  func.func @transform_1(%arg0: i32) -> (i32, i32) {
    %c0_i32 = arith.constant 0 : i32
    %c0_i32_0 = arith.constant 0 : i32
    %c0_i32_1 = arith.constant 0 : i32
    return %c0_i32, %c0_i32_0 : i32, i32
  }
  func.func @transform_2(%arg0: i32) -> (i32, i32) {
    %c0_i32 = arith.constant 0 : i32
    %c0_i32_0 = arith.constant 0 : i32
    %c0_i32_1 = arith.constant 0 : i32
    return %c0_i32, %c0_i32_0 : i32, i32
  }
  func.func @transform_3(%arg0: i32) -> (i32, i32) {
    %c0_i32 = arith.constant 0 : i32
    %c0_i32_0 = arith.constant 0 : i32
    %c0_i32_1 = arith.constant 0 : i32
    return %c0_i32, %c0_i32_0 : i32, i32
  }
  func.func @transform_4(%arg0: i32) -> (i32, i32) {
    %c0_i32 = arith.constant 0 : i32
    %c0_i32_0 = arith.constant 0 : i32
    %c0_i32_1 = arith.constant 0 : i32
    return %c0_i32, %c0_i32_0 : i32, i32
  }
  func.func @transform_5(%arg0: i32) -> (i32, i32) {
    %c0_i32 = arith.constant 0 : i32
    %c0_i32_0 = arith.constant 0 : i32
    %c0_i32_1 = arith.constant 0 : i32
    return %c0_i32, %c0_i32_0 : i32, i32
  }
  func.func @transform_6(%arg0: i32) -> (i32, i32) {
    %c0_i32 = arith.constant 0 : i32
    %c0_i32_0 = arith.constant 0 : i32
    %c0_i32_1 = arith.constant 0 : i32
    return %c0_i32, %c0_i32_0 : i32, i32
  }
  func.func @transform_7(%arg0: i32) -> (i32, i32) {
    %c0_i32 = arith.constant 0 : i32
    %c0_i32_0 = arith.constant 0 : i32
    return %arg0, %c0_i32 : i32, i32
  }
}

</mosaic_0001>

<bundles_post_ra>
// kernel: tpu_custom_call.1
= control target key start
LH: loop header
LB: loop body
LE: loop exit
PB: predicated region body
PF: predicated region fallthrough
CT: control target
= control target key end

     0   :  { %12 = vsyncpa [#allocation3], 0  ;;  %s3029_s0 = inlined_call_operand.hbm [shape: f32[16,784], index: 0, kind: input, shape index: {}]   ;;  %s3030_s1 = inlined_call_operand.hbm [shape: bf16[784,384], index: 1, kind: input, shape index: {}]   ;;  %s3031_s2 = inlined_call_operand.hbm [shape: f32[1,384], index: 2, kind: input, shape index: {}]   ;;  %s3032_s3 = inlined_call_operand.hbm [shape: bf16[384,128], index: 3, kind: input, shape index: {}]   ;;  %s3033_s4 = inlined_call_operand.vmem [shape: f32[1,128], index: 4, kind: input, shape index: {}]   ;;  %s3034_s5 = inlined_call_operand.hbm [shape: bf16[128,128], index: 5, kind: input, shape index: {}]   ;;  %s3035_s6 = inlined_call_operand.vmem [shape: f32[1,128], index: 6, kind: input, shape index: {}]   ;;  %s3036_s7 = inlined_call_operand.hbm [shape: bf16[16,128], index: 7, kind: output, shape index: {}]  }
   0x1   :  { %13 = vsyncpa [#allocation6], 0 }
   0x2   :  { %14 = vsyncpa [#allocation9], 0  ;;  %s33_s26 = sshll.u32 %s3030_s1, 4  ;;  %s34_s26 = int_to_ptr.hbm [resolvable:$true] %s33_s26 }
   0x3   :  { %15 = vsyncpa [#allocation4], 0  ;;  %s2901_s27 = smov [#allocation5]   ;;  %s57_s8 = sshll.u32 %s3032_s3, 4  ;;  %s58_s8 = int_to_ptr.hbm [resolvable:$true] %s57_s8 }
   0x4   :  { %s35_s28 = sshll.u32 %s2901_s27, 4  ;;  %s2902_s9 = smov 192   ;;  %s36_s28 = int_to_ptr.vmem [resolvable:$true] %s35_s28 }
   0x5   :  { %s2903_s10 = smov 12   ;;  %s2904_s11 = smov [#allocation8]  }
   0x6   :  { %41 = dma.hbm_to_vmem [thread:$0]  %s34_s26, 18816, %s36_s28, [#allocation6], %s2902_s9, %s2902_s9, %s2903_s10  }
   0x7   :  { %s59_s12 = sshll.u32 %s2904_s11, 4  ;;  %s2905_s13 = smov 64   ;;  %s60_s12 = int_to_ptr.vmem [resolvable:$true] %s59_s12 }
   0x8   :  { %s2906_s14 = smov 4   ;;  %s20_s16 = sshll.u32 %s3029_s0, 4  ;;  %s21_s16 = int_to_ptr.hbm [resolvable:$true] %s20_s16 }
   0x9   :  { %65 = dma.hbm_to_vmem [thread:$0]  %s58_s8, 3072, %s60_s12, [#allocation9], %s2905_s13, %s2905_s13, %s2906_s14  }
   0xa   :  { %s2907_s17 = smov [#allocation2]   ;;  %s47_s20 = sshll.u32 %s3031_s2, 4  ;;  %s48_s20 = int_to_ptr.hbm [resolvable:$true] %s47_s20 }
   0xb   :  { %s22_s3 = sshll.u32 %s2907_s17, 4  ;;  %s2908_s21 = smov 896   ;;  %s23_s3 = int_to_ptr.vmem [resolvable:$true] %s22_s3 }
   0xc   :  { %s2909_s22 = smov 56   ;;  %s2910_s23 = smov [#allocation7]  }
   0xd   :  { %28 = dma.hbm_to_vmem [thread:$0]  %s21_s16, 1792, %s23_s3, [#allocation3], %s2908_s21, %s2908_s21, %s2909_s22  }
   0xe   :  { %s49_s24 = sshll.u32 %s2910_s23, 4  ;;  %s72_s27 = sshll.u32 %s3034_s5, 4  ;;  %s50_s24 = int_to_ptr.vmem [resolvable:$true] %s49_s24  ;;  %s73_s27 = int_to_ptr.hbm [resolvable:$true] %s72_s27 }
   0xf   :  { %52 = dma.hbm_to_vmem [thread:$0]  %s48_s20, 48, %s50_s24, [#allocation6]  }
  0x10   :  { %s2911_s0 = smov [#allocation10]  }
  0x11   :  { %s74_s28 = sshll.u32 %s2911_s0, 4  ;;  %s75_s28 = int_to_ptr.vmem [resolvable:$true] %s74_s28 }
  0x12   :  { %80 = dma.hbm_to_vmem [thread:$0]  %s73_s27, 1024, %s75_s28, [#allocation9], %s2905_s13, %s2905_s13, %s2906_s14  }
  0x13   :  { %2893 = dma.done.wait [#allocation3], 1792  }
  0x14   :  { %2894 = vsyncadd [#allocation3], 4294965504 }
  0x15   :  { %2895 = dma.done.wait [#allocation6], 18864  }
  0x16   :  { %2896 = vsyncadd [#allocation6], 4294948432 }
  0x17   :  { %2897 = dma.done.wait [#allocation9], 4096  }
  0x18   :  { %2898 = vsyncadd [#allocation9], 4294963200  ;;  %v1886_v0 = vld [vmem:[#allocation5 + $0xa8] sm:$0xf]  ;;  %v2541_v1 = vld [vmem:[#allocation5 + $0xb0] sm:$0xf0] }
  0x19   :  { %v1982_v2 = vld [vmem:[#allocation5 + $0x168] sm:$0xf]  ;;  %v1887_v3 = vor.u32 %v2541_v1, %v1886_v0  ;;  %v2565_v4 = vld [vmem:[#allocation5 + $0x170] sm:$0xf0]  ;;  %v1874_v11 = vld [vmem:[#allocation5 + $0x90] sm:$0xf] }
  0x1a   :  { %v2078_v5 = vld [vmem:[#allocation5 + $0x228] sm:$0xf]  ;;  %v2589_v6 = vld [vmem:[#allocation5 + $0x230] sm:$0xf0]  ;;  %v1983_v7 = vor.u32 %v2565_v4, %v1982_v2  ;;  %v2538_v13 = vld [vmem:[#allocation5 + $0x98] sm:$0xf0] }
  0x1b   :  { %v2079_v8 = vor.u32 %v2589_v6, %v2078_v5  ;;  %v2174_v9 = vld [vmem:[#allocation5 + $0x2e8] sm:$0xf]  ;;  %v2613_v10 = vld [vmem:[#allocation5 + $0x2f0] sm:$0xf0]  ;;  %1117 = vmatpush.bf16.msra.mxu0 %v1887_v3  ;;  %v1970_v14 = vld [vmem:[#allocation5 + $0x150] sm:$0xf]  ;;  %v1875_v16 = vor.u32 %v2538_v13, %v1874_v11 }
  0x1c   :  { %v2175_v12 = vor.u32 %v2613_v10, %v2174_v9  ;;  %v2562_v15 = vld [vmem:[#allocation5 + $0x158] sm:$0xf0]  ;;  %1131 = vmatpush.bf16.msra.mxu1 %v1983_v7  ;;  %v2066_v18 = vld [vmem:[#allocation5 + $0x210] sm:$0xf]  ;;  %v1862_v23 = vld [vmem:[#allocation5 + $0x78] sm:$0xf] }
  0x1d   :  { %1145 = vmatpush.bf16.msra.mxu2 %v2079_v8  ;;  %v1971_v17 = vor.u32 %v2562_v15, %v1970_v14  ;;  %v2586_v19 = vld [vmem:[#allocation5 + $0x218] sm:$0xf0]  ;;  %v2162_v20 = vld [vmem:[#allocation5 + $0x2d0] sm:$0xf]  ;;  %v2535_v24 = vld [vmem:[#allocation5 + $0x80] sm:$0xf0] }
  0x1e   :  { %1159 = vmatpush.bf16.msra.mxu3 %v2175_v12  ;;  %v2067_v21 = vor.u32 %v2586_v19, %v2066_v18  ;;  %v2610_v22 = vld [vmem:[#allocation5 + $0x2d8] sm:$0xf0]  ;;  %v1958_v26 = vld [vmem:[#allocation5 + $0x138] sm:$0xf]  ;;  %v2559_v27 = vld [vmem:[#allocation5 + $0x140] sm:$0xf0]  ;;  %v1863_v29 = vor.u32 %v2535_v24, %v1862_v23 }
  0x1f   :  { %v2163_v25 = vor.u32 %v2610_v22, %v2162_v20  ;;  %v2054_v28 = vld [vmem:[#allocation5 + $0x1f8] sm:$0xf]  ;;  %1118 = vmatpush.bf16.msra.mxu0 %v1875_v16  ;;  %v2583_v30 = vld [vmem:[#allocation5 + $0x200] sm:$0xf0]  ;;  %v1959_v33 = vor.u32 %v2559_v27, %v1958_v26  ;;  %v1850_v35 = vld [vmem:[#allocation5 + $0x60] sm:$0xf] }
  0x20   :  { %v2150_v31 = vld [vmem:[#allocation5 + $0x2b8] sm:$0xf]  ;;  %v2607_v32 = vld [vmem:[#allocation5 + $0x2c0] sm:$0xf0]  ;;  %1132 = vmatpush.bf16.msra.mxu1 %v1971_v17  ;;  %v2055_v34 = vor.u32 %v2583_v30, %v2054_v28  ;;  %v2532_v36 = vld [vmem:[#allocation5 + $0x68] sm:$0xf0] }
  0x21   :  { %1146 = vmatpush.bf16.msra.mxu2 %v2067_v21  ;;  %v1946_v37 = vld [vmem:[#allocation5 + $0x120] sm:$0xf]  ;;  %v2151_v38 = vor.u32 %v2607_v32, %v2150_v31  ;;  %v2556_v39 = vld [vmem:[#allocation5 + $0x128] sm:$0xf0]  ;;  %v1851_v44 = vor.u32 %v2532_v36, %v1850_v35  ;;  %v1838_v47 = vld [vmem:[#allocation5 + $0x48] sm:$0xf] }
  0x22   :  { %1160 = vmatpush.bf16.msra.mxu3 %v2163_v25  ;;  %v2042_v40 = vld [vmem:[#allocation5 + $0x1e0] sm:$0xf]  ;;  %v2580_v41 = vld [vmem:[#allocation5 + $0x1e8] sm:$0xf0]  ;;  %v1947_v45 = vor.u32 %v2556_v39, %v1946_v37  ;;  %v2529_v48 = vld [vmem:[#allocation5 + $0x50] sm:$0xf0] }
  0x23   :  { %v2138_v42 = vld [vmem:[#allocation5 + $0x2a0] sm:$0xf]  ;;  %v2604_v43 = vld [vmem:[#allocation5 + $0x2a8] sm:$0xf0]  ;;  %1119 = vmatpush.bf16.msra.mxu0 %v1863_v29  ;;  %v2043_v46 = vor.u32 %v2580_v41, %v2042_v40  ;;  %v1934_v49 = vld [vmem:[#allocation5 + $0x108] sm:$0xf]  ;;  %v1839_v56 = vor.u32 %v2529_v48, %v1838_v47 }
  0x24   :  { %1133 = vmatpush.bf16.msra.mxu1 %v1959_v33  ;;  %v2139_v50 = vor.u32 %v2604_v43, %v2138_v42  ;;  %v2553_v51 = vld [vmem:[#allocation5 + $0x110] sm:$0xf0]  ;;  %v2030_v52 = vld [vmem:[#allocation5 + $0x1c8] sm:$0xf]  ;;  %v1826_v59 = vld [vmem:[#allocation5 + $0x30] sm:$0xf] }
  0x25   :  { %1147 = vmatpush.bf16.msra.mxu2 %v2055_v34  ;;  %v2577_v53 = vld [vmem:[#allocation5 + $0x1d0] sm:$0xf0]  ;;  %v2126_v54 = vld [vmem:[#allocation5 + $0x288] sm:$0xf]  ;;  %v1935_v57 = vor.u32 %v2553_v51, %v1934_v49  ;;  %v2526_v60 = vld [vmem:[#allocation5 + $0x38] sm:$0xf0] }
  0x26   :  { %1161 = vmatpush.bf16.msra.mxu3 %v2151_v38  ;;  %v2601_v55 = vld [vmem:[#allocation5 + $0x290] sm:$0xf0]  ;;  %v2031_v58 = vor.u32 %v2577_v53, %v2030_v52  ;;  %v1922_v61 = vld [vmem:[#allocation5 + $0xf0] sm:$0xf]  ;;  %v2550_v63 = vld [vmem:[#allocation5 + $0xf8] sm:$0xf0]  ;;  %v1827_v4 = vor.u32 %v2526_v60, %v1826_v59 }
  0x27   :  { %1120 = vmatpush.bf16.msra.mxu0 %v1851_v44  ;;  %v2127_v62 = vor.u32 %v2601_v55, %v2126_v54  ;;  %v2018_v0 = vld [vmem:[#allocation5 + $0x1b0] sm:$0xf]  ;;  %v2574_v1 = vld [vmem:[#allocation5 + $0x1b8] sm:$0xf0]  ;;  %v1923_v5 = vor.u32 %v2550_v63, %v1922_v61  ;;  %v1814_v7 = vld [vmem:[#allocation5 + $0x18] sm:$0xf] }
  0x28   :  { %1134 = vmatpush.bf16.msra.mxu1 %v1947_v45  ;;  %v2114_v2 = vld [vmem:[#allocation5 + $0x270] sm:$0xf]  ;;  %v2598_v3 = vld [vmem:[#allocation5 + $0x278] sm:$0xf0]  ;;  %v2019_v6 = vor.u32 %v2574_v1, %v2018_v0  ;;  %v2523_v8 = vld [vmem:[#allocation5 + $0x20] sm:$0xf0] }
  0x29   :  { %1148 = vmatpush.bf16.msra.mxu2 %v2043_v46  ;;  %v1910_v9 = vld [vmem:[#allocation5 + $0xd8] sm:$0xf]  ;;  %v2115_v10 = vor.u32 %v2598_v3, %v2114_v2  ;;  %v2547_v11 = vld [vmem:[#allocation5 + $0xe0] sm:$0xf0]  ;;  %v1815_v16 = vor.u32 %v2523_v8, %v1814_v7  ;;  %v1802_v17 = vld [vmem:[#allocation5] sm:$0xf] }
  0x2a   :  { %1162 = vmatpush.bf16.msra.mxu3 %v2139_v50  ;;  %v2006_v12 = vld [vmem:[#allocation5 + $0x198] sm:$0xf]  ;;  %v2571_v13 = vld [vmem:[#allocation5 + $0x1a0] sm:$0xf0]  ;;  %v2520_v18 = vld [vmem:[#allocation5 + $0x8] sm:$0xf0]  ;;  %v1911_v19 = vor.u32 %v2547_v11, %v1910_v9 }
  0x2b   :  { %1121 = vmatpush.bf16.msra.mxu0 %v1839_v56  ;;  %v2102_v14 = vld [vmem:[#allocation5 + $0x258] sm:$0xf]  ;;  %v2595_v15 = vld [vmem:[#allocation5 + $0x260] sm:$0xf0]  ;;  %v2007_v20 = vor.u32 %v2571_v13, %v2006_v12  ;;  %v1898_v21 = vld [vmem:[#allocation5 + $0xc0] sm:$0xf]  ;;  %v1803_v31 = vor.u32 %v2520_v18, %v1802_v17 }
  0x2c   :  { %1135 = vmatpush.bf16.msra.mxu1 %v1935_v57  ;;  %v2544_v22 = vld [vmem:[#allocation5 + $0xc8] sm:$0xf0]  ;;  %v1994_v23 = vld [vmem:[#allocation5 + $0x180] sm:$0xf]  ;;  %v2103_v24 = vor.u32 %v2595_v15, %v2102_v14  ;;  %v2270_v28 = vld [vmem:[#allocation5 + $0x3a8] sm:$0xf] }
  0x2d   :  { %1149 = vmatpush.bf16.msra.mxu2 %v2031_v58  ;;  %v2568_v25 = vld [vmem:[#allocation5 + $0x188] sm:$0xf0]  ;;  %v2090_v26 = vld [vmem:[#allocation5 + $0x240] sm:$0xf]  ;;  %v2637_v29 = vld [vmem:[#allocation5 + $0x3b0] sm:$0xf0]  ;;  %v1899_v35 = vor.u32 %v2544_v22, %v1898_v21 }
  0x2e   :  { %1163 = vmatpush.bf16.msra.mxu3 %v2127_v62  ;;  %v2592_v27 = vld [vmem:[#allocation5 + $0x248] sm:$0xf0]  ;;  %v2366_v30 = vld [vmem:[#allocation5 + $0x468] sm:$0xf]  ;;  %v2661_v32 = vld [vmem:[#allocation5 + $0x470] sm:$0xf0]  ;;  %v1995_v36 = vor.u32 %v2568_v25, %v1994_v23  ;;  %v2271_v41 = vor.u32 %v2637_v29, %v2270_v28 }
  0x2f   :  { %1122 = vmatpush.bf16.msra.mxu0 %v1827_v4  ;;  %v2540_v33 = vld [vmem:[#allocation5 + $0xac] sm:$0xf]  ;;  %v1888_v34 = vld [vmem:[#allocation5 + $0xb4] sm:$0xf0]  ;;  %v2378_v37 = vld [vmem:[#allocation5 + $0x480] sm:$0xf]  ;;  %v2091_v40 = vor.u32 %v2592_v27, %v2090_v26  ;;  %v2367_v45 = vor.u32 %v2661_v32, %v2366_v30 }
  0x30   :  { %1136 = vmatpush.bf16.msra.mxu1 %v1923_v5  ;;  %v2664_v38 = vld [vmem:[#allocation5 + $0x488] sm:$0xf0]  ;;  %v106_v39 = vld [vmem:[#allocation2 + $0x10] sm:$0xff]  ;;  %v113_v42 = vld [vmem:[#allocation2 + $0x48] sm:$0xff]  ;;  %v1891_v46 = vor.u32 %v2540_v33, %v1888_v34  ;;  %vm1113_vm0 = vcmask 130048   ;;  %s2912_s30 = smov [#allocation11]  }
  0x31   :  { %1150 = vmatpush.bf16.msra.mxu2 %v2019_v6  ;;  %v2564_v43 = vld [vmem:[#allocation5 + $0x16c] sm:$0xf]  ;;  %v1984_v44 = vld [vmem:[#allocation5 + $0x174] sm:$0xf0]  ;;  %v2258_v47 = vld [vmem:[#allocation5 + $0x390] sm:$0xf]  ;;  %v2379_v50 = vor.u32 %v2664_v38, %v2378_v37  ;;  %v2974_v54 = vpack.c.bf16 %v113_v42, %v106_v39 }
  0x32   :  { %1164 = vmatpush.bf16.msra.mxu3 %v2115_v10  ;;  %v2634_v48 = vld [vmem:[#allocation5 + $0x398] sm:$0xf0]  ;;  %v2354_v49 = vld [vmem:[#allocation5 + $0x450] sm:$0xf]  ;;  %v2537_v52 = vld [vmem:[#allocation5 + $0x94] sm:$0xf]  ;;  %v1987_v56 = vor.u32 %v2564_v43, %v1984_v44 }
  0x33   :  { %1123 = vmatpush.bf16.msra.mxu0 %v1815_v16  ;;  %v2658_v51 = vld [vmem:[#allocation5 + $0x458] sm:$0xf0]  ;;  %v1876_v53 = vld [vmem:[#allocation5 + $0x9c] sm:$0xf0]  ;;  %v104_v55 = vld [vmem:[#allocation2] sm:$0xff]  ;;  %v2259_v57 = vor.u32 %v2634_v48, %v2258_v47  ;;  %s1783_s8 = sshll.u32 %s2912_s30, 4  ;;  %s1784_s8 = int_to_ptr.vmem [resolvable:$true] %s1783_s8 }
  0x34   :  { %1137 = vmatpush.bf16.msra.mxu1 %v1911_v19  ;;  %v2561_v58 = vld [vmem:[#allocation5 + $0x154] sm:$0xf]  ;;  %v1972_v59 = vld [vmem:[#allocation5 + $0x15c] sm:$0xf0]  ;;  %v111_v60 = vld [vmem:[#allocation2 + $0x38] sm:$0xff]  ;;  %v2355_v61 = vor.u32 %v2658_v51, %v2354_v49  ;;  %v1879_v62 = vor.u32 %v2537_v52, %v1876_v53  ;;  %s1785_s11 = sshll.u32 %s3036_s7, 4  ;;  %s1786_s11 = int_to_ptr.hbm [resolvable:$true] %s1785_s11 }
  0x35   :  { %1151 = vmatpush.bf16.msra.mxu2 %v2007_v20  ;;  %v2246_v63 = vld [vmem:[#allocation5 + $0x378] sm:$0xf]  ;;  %v2631_v0 = vld [vmem:[#allocation5 + $0x380] sm:$0xf0]  ;;  %v2976_v2 = vpack.c.bf16 %v111_v60, %v104_v55  ;;  %v2534_v4 = vld [vmem:[#allocation5 + $0x7c] sm:$0xf]  ;;  %v1975_v9 = vor.u32 %v2561_v58, %v1972_v59 }
  0x36   :  { %1165 = vmatpush.bf16.msra.mxu3 %v2103_v24  ;;  %v2342_v1 = vld [vmem:[#allocation5 + $0x438] sm:$0xf]  ;;  %v2655_v3 = vld [vmem:[#allocation5 + $0x440] sm:$0xf0]  ;;  %v1864_v5 = vld [vmem:[#allocation5 + $0x84] sm:$0xf0]  ;;  %v2247_v10 = vor.u32 %v2631_v0, %v2246_v63 }
  0x37   :  { %1124 = vmatpush.bf16.msra.mxu0 %v1803_v31  ;;  %v105_v6 = vld [vmem:[#allocation2 + $0x8] sm:$0xff]  ;;  %v112_v7 = vld [vmem:[#allocation2 + $0x40] sm:$0xff]  ;;  %v107_v8 = vld [vmem:[#allocation2 + $0x18] sm:$0xff]  ;;  %v2343_v15 = vor.u32 %v2655_v3, %v2342_v1  ;;  %v1867_v16 = vor.u32 %v2534_v4, %v1864_v5 }
  0x38   :  { %1138 = vmatpush.bf16.msra.mxu1 %v1899_v35  ;;  %v2558_v11 = vld [vmem:[#allocation5 + $0x13c] sm:$0xf]  ;;  %v1960_v12 = vld [vmem:[#allocation5 + $0x144] sm:$0xf0]  ;;  %v2980_v13 = vpack.c.bf16 %v112_v7, %v105_v6  ;;  %v114_v14 = vld [vmem:[#allocation2 + $0x50] sm:$0xff] }
  0x39   :  { %1152 = vmatpush.bf16.msra.mxu2 %v1995_v36  ;;  %v2234_v17 = vld [vmem:[#allocation5 + $0x360] sm:$0xf]  ;;  %v2628_v18 = vld [vmem:[#allocation5 + $0x368] sm:$0xf0]  ;;  %v2982_v20 = vpack.c.bf16 %v114_v14, %v107_v8  ;;  %v2531_v22 = vld [vmem:[#allocation5 + $0x64] sm:$0xf]  ;;  %v1963_v24 = vor.u32 %v2558_v11, %v1960_v12 }
  0x3a   :  { %1166 = vmatpush.bf16.msra.mxu3 %v2091_v40  ;;  %1125 = vmatmul.bf16.vlgmr.msra.gmra.mxu0 %v2976_v2  ;;  %v2330_v19 = vld [vmem:[#allocation5 + $0x420] sm:$0xf]  ;;  %v2652_v21 = vld [vmem:[#allocation5 + $0x428] sm:$0xf0]  ;;  %v1852_v23 = vld [vmem:[#allocation5 + $0x6c] sm:$0xf0]  ;;  %v2235_v25 = vor.u32 %v2628_v18, %v2234_v17 }
  0x3b   :  { %1173 = vmatpush.bf16.msrb.mxu0 %v2271_v41  ;;  %1139 = vmatmul.bf16.vlgmr.msra.gmra.mxu1 %v2980_v13  ;;  %v2555_v26 = vld [vmem:[#allocation5 + $0x124] sm:$0xf]  ;;  %v1948_v27 = vld [vmem:[#allocation5 + $0x12c] sm:$0xf0]  ;;  %v2331_v28 = vor.u32 %v2652_v21, %v2330_v19  ;;  %v1855_v29 = vor.u32 %v2531_v22, %v1852_v23  ;;  %v2222_v30 = vld [vmem:[#allocation5 + $0x348] sm:$0xf] }
  0x3c   :  { %1187 = vmatpush.bf16.msrb.mxu1 %v2367_v45  ;;  %1153 = vmatmul.bf16.vlgmr.msra.gmra.mxu2 %v2974_v54  ;;  %v2625_v31 = vld [vmem:[#allocation5 + $0x350] sm:$0xf0]  ;;  %v2318_v32 = vld [vmem:[#allocation5 + $0x408] sm:$0xf]  ;;  %v2528_v34 = vld [vmem:[#allocation5 + $0x4c] sm:$0xf]  ;;  %v1951_v37 = vor.u32 %v2555_v26, %v1948_v27 }
  0x3d   :  { %1208 = vmatpush.bf16.msrb.mxu2 %v2379_v50  ;;  %1167 = vmatmul.bf16.vlgmr.msra.gmra.mxu3 %v2982_v20  ;;  %v2649_v33 = vld [vmem:[#allocation5 + $0x410] sm:$0xf0]  ;;  %v1840_v35 = vld [vmem:[#allocation5 + $0x54] sm:$0xf0]  ;;  %v2552_v36 = vld [vmem:[#allocation5 + $0x10c] sm:$0xf]  ;;  %v2223_v38 = vor.u32 %v2625_v31, %v2222_v30 }
  0x3e   :  { %1215 = vmatpush.bf16.msrb.mxu3 %v1891_v46  ;;  %v1936_v39 = vld [vmem:[#allocation5 + $0x114] sm:$0xf0]  ;;  %v110_v40 = vld [vmem:[#allocation2 + $0x30] sm:$0xff]  ;;  %v2319_v42 = vor.u32 %v2649_v33, %v2318_v32  ;;  %v1843_v43 = vor.u32 %v2528_v34, %v1840_v35  ;;  %v2210_v44 = vld [vmem:[#allocation5 + $0x330] sm:$0xf] }
  0x3f   :  { %1174 = vmatpush.bf16.msrb.mxu0 %v2259_v57  ;;  %v117_v41 = vld [vmem:[#allocation2 + $0x68] sm:$0xff]  ;;  %v2306_v46 = vld [vmem:[#allocation5 + $0x3f0] sm:$0xf]  ;;  %v2525_v48 = vld [vmem:[#allocation5 + $0x34] sm:$0xf]  ;;  %v1939_v51 = vor.u32 %v2552_v36, %v1936_v39 }
  0x40   :  { %1188 = vmatpush.bf16.msrb.mxu1 %v2355_v61  ;;  %v2622_v45 = vld [vmem:[#allocation5 + $0x338] sm:$0xf0]  ;;  %v1828_v49 = vld [vmem:[#allocation5 + $0x3c] sm:$0xf0]  ;;  %v2986_v50 = vpack.c.bf16 %v117_v41, %v110_v40  ;;  %v2549_v53 = vld [vmem:[#allocation5 + $0xf4] sm:$0xf] }
  0x41   :  { %1229 = vmatpush.bf16.msra.mxu2 %v1987_v56  ;;  %v2646_v47 = vld [vmem:[#allocation5 + $0x3f8] sm:$0xf0]  ;;  %v2211_v52 = vor.u32 %v2622_v45, %v2210_v44  ;;  %v1924_v55 = vld [vmem:[#allocation5 + $0xfc] sm:$0xf0]  ;;  %v1831_v57 = vor.u32 %v2525_v48, %v1828_v49  ;;  %v2198_v58 = vld [vmem:[#allocation5 + $0x318] sm:$0xf] }
  0x42   :  { %1216 = vmatpush.bf16.msrb.mxu3 %v1879_v62  ;;  %v2307_v56 = vor.u32 %v2646_v47, %v2306_v46  ;;  %v2619_v59 = vld [vmem:[#allocation5 + $0x320] sm:$0xf0]  ;;  %v2294_v60 = vld [vmem:[#allocation5 + $0x3d8] sm:$0xf]  ;;  %v2522_v62 = vld [vmem:[#allocation5 + $0x1c] sm:$0xf]  ;;  %v1927_v3 = vor.u32 %v2549_v53, %v1924_v55 }
  0x43   :  { %1175 = vmatpush.bf16.msrb.mxu0 %v2247_v10  ;;  %v2643_v61 = vld [vmem:[#allocation5 + $0x3e0] sm:$0xf0]  ;;  %v1816_v63 = vld [vmem:[#allocation5 + $0x24] sm:$0xf0]  ;;  %v2546_v0 = vld [vmem:[#allocation5 + $0xdc] sm:$0xf]  ;;  %v2199_v4 = vor.u32 %v2619_v59, %v2198_v58 }
  0x44   :  { %1189 = vmatpush.bf16.msrb.mxu1 %v2343_v15  ;;  %v1912_v1 = vld [vmem:[#allocation5 + $0xe4] sm:$0xf0]  ;;  %v2186_v5 = vld [vmem:[#allocation5 + $0x300] sm:$0xf]  ;;  %v2616_v6 = vld [vmem:[#allocation5 + $0x308] sm:$0xf0]  ;;  %v2295_v8 = vor.u32 %v2643_v61, %v2294_v60 }
  0x45   :  { %1230 = vmatpush.bf16.msra.mxu2 %v1975_v9  ;;  %v2282_v7 = vld [vmem:[#allocation5 + $0x3c0] sm:$0xf]  ;;  %v1819_v9 = vor.u32 %v2522_v62, %v1816_v63  ;;  %v2640_v10 = vld [vmem:[#allocation5 + $0x3c8] sm:$0xf0]  ;;  %v2519_v11 = vld [vmem:[#allocation5 + $0x4] sm:$0xf]  ;;  %v1915_v21 = vor.u32 %v2546_v0, %v1912_v1  ;;  %v2187_v22 = vor.u32 %v2616_v6, %v2186_v5 }
  0x46   :  { %1217 = vmatpush.bf16.msrb.mxu3 %v1867_v16  ;;  %v1804_v12 = vld [vmem:[#allocation5 + $0xc] sm:$0xf0]  ;;  %v2588_v14 = vld [vmem:[#allocation5 + $0x22c] sm:$0xf]  ;;  %v2080_v15 = vld [vmem:[#allocation5 + $0x234] sm:$0xf0]  ;;  %v2283_v26 = vor.u32 %v2640_v10, %v2282_v7 }
  0x47   :  { %1176 = vmatpush.bf16.msrb.mxu0 %v2235_v25  ;;  %v2612_v16 = vld [vmem:[#allocation5 + $0x2ec] sm:$0xf]  ;;  %v2176_v17 = vld [vmem:[#allocation5 + $0x2f4] sm:$0xf0]  ;;  %v108_v23 = vld [vmem:[#allocation2 + $0x20] sm:$0xff]  ;;  %v1807_v27 = vor.u32 %v2519_v11, %v1804_v12  ;;  %v2083_v31 = vor.u32 %v2588_v14, %v2080_v15 }
  0x48   :  { %1190 = vmatpush.bf16.msrb.mxu1 %v2331_v28  ;;  %v2636_v18 = vld [vmem:[#allocation5 + $0x3ac] sm:$0xf]  ;;  %v2272_v19 = vld [vmem:[#allocation5 + $0x3b4] sm:$0xf0]  ;;  %v2543_v25 = vld [vmem:[#allocation5 + $0xc4] sm:$0xf]  ;;  %v2179_v32 = vor.u32 %v2612_v16, %v2176_v17 }
  0x49   :  { %1231 = vmatpush.bf16.msra.mxu2 %v1963_v24  ;;  %v115_v24 = vld [vmem:[#allocation2 + $0x58] sm:$0xff]  ;;  %v1900_v28 = vld [vmem:[#allocation5 + $0xcc] sm:$0xf0]  ;;  %v2368_v34 = vld [vmem:[#allocation5 + $0x474] sm:$0xf0]  ;;  %v2275_v36 = vor.u32 %v2636_v18, %v2272_v19 }
  0x4a   :  { %1218 = vmatpush.bf16.msrb.mxu3 %v1855_v29  ;;  %v109_v29 = vld [vmem:[#allocation2 + $0x28] sm:$0xff]  ;;  %v116_v30 = vld [vmem:[#allocation2 + $0x60] sm:$0xff]  ;;  %v2660_v33 = vld [vmem:[#allocation5 + $0x46c] sm:$0xf]  ;;  %v1903_v41 = vor.u32 %v2543_v25, %v1900_v28 }
  0x4b   :  { %1177 = vmatpush.bf16.msrb.mxu0 %v2223_v38  ;;  %v2585_v35 = vld [vmem:[#allocation5 + $0x214] sm:$0xf]  ;;  %v2068_v38 = vld [vmem:[#allocation5 + $0x21c] sm:$0xf0]  ;;  %v2371_v45 = vor.u32 %v2660_v33, %v2368_v34  ;;  %v2056_v53 = vld [vmem:[#allocation5 + $0x204] sm:$0xf0] }
  0x4c   :  { %1191 = vmatpush.bf16.msrb.mxu1 %v2319_v42  ;;  %2388 = vmatmul.msk.bf16.vlgmr.msrb.gmra.mxu2 %vm1113_vm0, %v2986_v50  ;;  %v2609_v39 = vld [vmem:[#allocation5 + $0x2d4] sm:$0xf]  ;;  %v2164_v40 = vld [vmem:[#allocation5 + $0x2dc] sm:$0xf0]  ;;  %v2992_v42 = vpack.c.bf16 %v116_v30, %v109_v29  ;;  %v2071_v46 = vor.u32 %v2585_v35, %v2068_v38  ;;  %v2606_v55 = vld [vmem:[#allocation5 + $0x2bc] sm:$0xf] }
  0x4d   :  { %1232 = vmatpush.bf16.msra.mxu2 %v1951_v37  ;;  %v2990_v37 = vpack.c.bf16 %v115_v24, %v108_v23  ;;  %v2260_v44 = vld [vmem:[#allocation5 + $0x39c] sm:$0xf0]  ;;  %v2167_v47 = vor.u32 %v2609_v39, %v2164_v40  ;;  %v2657_v48 = vld [vmem:[#allocation5 + $0x454] sm:$0xf]  ;;  %v2248_v58 = vld [vmem:[#allocation5 + $0x384] sm:$0xf0] }
  0x4e   :  { %1219 = vmatpush.bf16.msrb.mxu3 %v1843_v43  ;;  %v2633_v43 = vld [vmem:[#allocation5 + $0x394] sm:$0xf]  ;;  %v2356_v49 = vld [vmem:[#allocation5 + $0x45c] sm:$0xf0]  ;;  %v2654_v62 = vld [vmem:[#allocation5 + $0x43c] sm:$0xf] }
  0x4f   :  { %1178 = vmatpush.bf16.msrb.mxu0 %v2211_v52  ;;  %v2263_v52 = vor.u32 %v2633_v43, %v2260_v44  ;;  %v2359_v59 = vor.u32 %v2657_v48, %v2356_v49  ;;  %v2344_v63 = vld [vmem:[#allocation5 + $0x444] sm:$0xf0]  ;;  %v2579_v0 = vld [vmem:[#allocation5 + $0x1e4] sm:$0xf]  ;;  %v2140_v5 = vld [vmem:[#allocation5 + $0x2ac] sm:$0xf0] }
  0x50   :  { %1192 = vmatpush.bf16.msrb.mxu1 %v2307_v56  ;;  %v2152_v56 = vld [vmem:[#allocation5 + $0x2c4] sm:$0xf0]  ;;  %v2627_v6 = vld [vmem:[#allocation5 + $0x364] sm:$0xf]  ;;  %v2236_v7 = vld [vmem:[#allocation5 + $0x36c] sm:$0xf0] }
  0x51   :  { %1233 = vmatpush.bf16.msra.mxu2 %v1939_v51  ;;  %v2582_v51 = vld [vmem:[#allocation5 + $0x1fc] sm:$0xf]  ;;  %v2155_v61 = vor.u32 %v2606_v55, %v2152_v56  ;;  %v2651_v11 = vld [vmem:[#allocation5 + $0x424] sm:$0xf]  ;;  %v2332_v12 = vld [vmem:[#allocation5 + $0x42c] sm:$0xf0]  ;;  %v2239_v15 = vor.u32 %v2627_v6, %v2236_v7 }
  0x52   :  { %1220 = vmatpush.bf16.msrb.mxu3 %v1831_v57  ;;  %v2630_v57 = vld [vmem:[#allocation5 + $0x37c] sm:$0xf]  ;;  %v2059_v60 = vor.u32 %v2582_v51, %v2056_v53  ;;  %v2576_v14 = vld [vmem:[#allocation5 + $0x1cc] sm:$0xf]  ;;  %v2032_v16 = vld [vmem:[#allocation5 + $0x1d4] sm:$0xf0] }
  0x53   :  { %1179 = vmatpush.bf16.msrb.mxu0 %v2199_v4  ;;  %v2251_v1 = vor.u32 %v2630_v57, %v2248_v58  ;;  %v2603_v4 = vld [vmem:[#allocation5 + $0x2a4] sm:$0xf]  ;;  %v2600_v17 = vld [vmem:[#allocation5 + $0x28c] sm:$0xf]  ;;  %v2128_v18 = vld [vmem:[#allocation5 + $0x294] sm:$0xf0]  ;;  %v2035_v23 = vor.u32 %v2576_v14, %v2032_v16 }
  0x54   :  { %1193 = vmatpush.bf16.msrb.mxu1 %v2295_v8  ;;  %v2347_v8 = vor.u32 %v2654_v62, %v2344_v63  ;;  %v2143_v10 = vor.u32 %v2603_v4, %v2140_v5  ;;  %v2624_v19 = vld [vmem:[#allocation5 + $0x34c] sm:$0xf]  ;;  %v2131_v24 = vor.u32 %v2600_v17, %v2128_v18  ;;  %v2020_v29 = vld [vmem:[#allocation5 + $0x1bc] sm:$0xf0]  ;;  %v2597_v30 = vld [vmem:[#allocation5 + $0x274] sm:$0xf] }
  0x55   :  { %1234 = vmatpush.bf16.msra.mxu2 %v1927_v3  ;;  %v2044_v3 = vld [vmem:[#allocation5 + $0x1ec] sm:$0xf0]  ;;  %v2648_v25 = vld [vmem:[#allocation5 + $0x40c] sm:$0xf]  ;;  %v2212_v33 = vld [vmem:[#allocation5 + $0x33c] sm:$0xf0] }
  0x56   :  { %1221 = vmatpush.bf16.msrb.mxu3 %v1819_v9  ;;  %v2047_v9 = vor.u32 %v2579_v0, %v2044_v3  ;;  %v2645_v38 = vld [vmem:[#allocation5 + $0x3f4] sm:$0xf]  ;;  %v2308_v39 = vld [vmem:[#allocation5 + $0x3fc] sm:$0xf0]  ;;  %v2570_v40 = vld [vmem:[#allocation5 + $0x19c] sm:$0xf] }
  0x57   :  { %1180 = vmatpush.bf16.msrb.mxu0 %v2187_v22  ;;  %v2335_v22 = vor.u32 %v2651_v11, %v2332_v12  ;;  %v2008_v43 = vld [vmem:[#allocation5 + $0x1a4] sm:$0xf0]  ;;  %v2594_v44 = vld [vmem:[#allocation5 + $0x25c] sm:$0xf]  ;;  %v2311_v48 = vor.u32 %v2645_v38, %v2308_v39  ;;  %v1996_v56 = vld [vmem:[#allocation5 + $0x18c] sm:$0xf0] }
  0x58   :  { %1194 = vmatpush.bf16.msrb.mxu1 %v2283_v26  ;;  %v2320_v26 = vld [vmem:[#allocation5 + $0x414] sm:$0xf0]  ;;  %v2642_v49 = vld [vmem:[#allocation5 + $0x3dc] sm:$0xf]  ;;  %v2296_v51 = vld [vmem:[#allocation5 + $0x3e4] sm:$0xf0]  ;;  %v2011_v53 = vor.u32 %v2570_v40, %v2008_v43 }
  0x59   :  { %1235 = vmatpush.bf16.msra.mxu2 %v1915_v21  ;;  %v2224_v21 = vld [vmem:[#allocation5 + $0x354] sm:$0xf0]  ;;  %v2323_v34 = vor.u32 %v2648_v25, %v2320_v26  ;;  %v2591_v57 = vld [vmem:[#allocation5 + $0x244] sm:$0xf]  ;;  %v2092_v58 = vld [vmem:[#allocation5 + $0x24c] sm:$0xf0]  ;;  %v2299_v3 = vor.u32 %v2642_v49, %v2296_v51 }
  0x5a   :  { %1222 = vmatpush.bf16.msrb.mxu3 %v1807_v27  ;;  %1181 = vmatmul.bf16.vlgmr.msrb.gmra.mxu0 %v2990_v37  ;;  %v2573_v27 = vld [vmem:[#allocation5 + $0x1b4] sm:$0xf]  ;;  %v2227_v28 = vor.u32 %v2624_v19, %v2224_v21  ;;  %v1894_v62 = vld [vmem:[#allocation5 + $0xb0] sm:$0xf]  ;;  %v2542_v63 = vld [vmem:[#allocation5 + $0xb8] sm:$0xf0]  ;;  %v2095_v7 = vor.u32 %v2591_v57, %v2092_v58 }
  0x5b   :  { %1243 = vmatpush.bf16.msra.mxu0 %v2083_v31  ;;  %1195 = vmatmul.bf16.vlgmr.msrb.gmra.mxu1 %v2992_v42  ;;  %v2116_v31 = vld [vmem:[#allocation5 + $0x27c] sm:$0xf0]  ;;  %v2023_v35 = vor.u32 %v2573_v27, %v2020_v29  ;;  %v1990_v0 = vld [vmem:[#allocation5 + $0x170] sm:$0xf]  ;;  %v2663_v4 = vld [vmem:[#allocation5 + $0x484] sm:$0xf]  ;;  %v1895_v11 = vor.u32 %v2542_v63, %v1894_v62 }
  0x5c   :  { %1257 = vmatpush.bf16.msra.mxu1 %v2179_v32  ;;  %v2621_v32 = vld [vmem:[#allocation5 + $0x334] sm:$0xf]  ;;  %v2380_v5 = vld [vmem:[#allocation5 + $0x48c] sm:$0xf0]  ;;  %v1882_v12 = vld [vmem:[#allocation5 + $0x98] sm:$0xf] }
  0x5d   :  { %1236 = vmatpush.bf16.msra.mxu2 %v1903_v41  ;;  %1223 = vmatmul.bf16.vlgmr.msrb.gmra.mxu3 %v2976_v2  ;;  %v2215_v41 = vor.u32 %v2621_v32, %v2212_v33  ;;  %v2539_v14 = vld [vmem:[#allocation5 + $0xa0] sm:$0xf0]  ;;  %v2182_v16 = vld [vmem:[#allocation5 + $0x2f0] sm:$0xf]  ;;  %v2614_v17 = vld [vmem:[#allocation5 + $0x2f8] sm:$0xf0]  ;;  %v2383_v18 = vor.u32 %v2663_v4, %v2380_v5 }
  0x5e   :  { %1271 = vmatpush.bf16.msra.mxu3 %v2275_v36  ;;  %v2119_v36 = vor.u32 %v2597_v30, %v2116_v31  ;;  %v1978_v21 = vld [vmem:[#allocation5 + $0x158] sm:$0xf]  ;;  %v1883_v25 = vor.u32 %v2539_v14, %v1882_v12  ;;  %v1870_v26 = vld [vmem:[#allocation5 + $0x80] sm:$0xf]  ;;  %v2183_v27 = vor.u32 %v2614_v17, %v2182_v16  ;;  %v2536_v29 = vld [vmem:[#allocation5 + $0x88] sm:$0xf0] }
  0x5f   :  { %1244 = vmatpush.bf16.msra.mxu0 %v2071_v46  ;;  %v2618_v46 = vld [vmem:[#allocation5 + $0x31c] sm:$0xf]  ;;  %v2170_v30 = vld [vmem:[#allocation5 + $0x2d8] sm:$0xf]  ;;  %v2611_v31 = vld [vmem:[#allocation5 + $0x2e0] sm:$0xf0]  ;;  %v1871_v38 = vor.u32 %v2536_v29, %v1870_v26 }
  0x60   :  { %1258 = vmatpush.bf16.msra.mxu1 %v2167_v47  ;;  %1237 = vmatmul.bf16.vlgmr.msra.gmra.mxu2 %v2980_v13  ;;  %v2200_v47 = vld [vmem:[#allocation5 + $0x324] sm:$0xf0]  ;;  %v1966_v32 = vld [vmem:[#allocation5 + $0x140] sm:$0xf]  ;;  %v2560_v33 = vld [vmem:[#allocation5 + $0x148] sm:$0xf0]  ;;  %v2171_v40 = vor.u32 %v2611_v31, %v2170_v30 }
  0x61   :  { %1285 = vmatpush.bf16.msrb.mxu2 %v2371_v45  ;;  %v2104_v45 = vld [vmem:[#allocation5 + $0x264] sm:$0xf0]  ;;  %v2533_v43 = vld [vmem:[#allocation5 + $0x70] sm:$0xf0]  ;;  %v2062_v49 = vld [vmem:[#allocation5 + $0x200] sm:$0xf] }
  0x62   :  { %1272 = vmatpush.bf16.msra.mxu3 %v2263_v52  ;;  %v2567_v52 = vld [vmem:[#allocation5 + $0x184] sm:$0xf]  ;;  %v2107_v55 = vor.u32 %v2594_v44, %v2104_v45  ;;  %v1858_v39 = vld [vmem:[#allocation5 + $0x68] sm:$0xf]  ;;  %v2158_v44 = vld [vmem:[#allocation5 + $0x2c0] sm:$0xf] }
  0x63   :  { %1245 = vmatpush.bf16.msra.mxu0 %v2059_v60  ;;  %v2615_v60 = vld [vmem:[#allocation5 + $0x304] sm:$0xf]  ;;  %v1999_v6 = vor.u32 %v2567_v52, %v1996_v56  ;;  %v2608_v45 = vld [vmem:[#allocation5 + $0x2c8] sm:$0xf0]  ;;  %v1859_v52 = vor.u32 %v2533_v43, %v1858_v39  ;;  %v2530_v57 = vld [vmem:[#allocation5 + $0x58] sm:$0xf0] }
  0x64   :  { %1259 = vmatpush.bf16.msra.mxu1 %v2155_v61  ;;  %v2188_v61 = vld [vmem:[#allocation5 + $0x30c] sm:$0xf0]  ;;  %v2584_v51 = vld [vmem:[#allocation5 + $0x208] sm:$0xf0]  ;;  %v2146_v58 = vld [vmem:[#allocation5 + $0x2a8] sm:$0xf] }
  0x65   :  { %1286 = vmatpush.bf16.msrb.mxu2 %v2359_v59  ;;  %v2203_v59 = vor.u32 %v2618_v46, %v2200_v47  ;;  %v1954_v46 = vld [vmem:[#allocation5 + $0x128] sm:$0xf]  ;;  %v2557_v47 = vld [vmem:[#allocation5 + $0x130] sm:$0xf0]  ;;  %v2063_v62 = vor.u32 %v2584_v51, %v2062_v49  ;;  %v1822_v14 = vld [vmem:[#allocation5 + $0x20] sm:$0xf] }
  0x66   :  { %1273 = vmatpush.bf16.msra.mxu3 %v2251_v1  ;;  %v2566_v1 = vld [vmem:[#allocation5 + $0x178] sm:$0xf0]  ;;  %v1955_v56 = vor.u32 %v2557_v47, %v1954_v46  ;;  %v2581_v4 = vld [vmem:[#allocation5 + $0x1f0] sm:$0xf0]  ;;  %v2038_v16 = vld [vmem:[#allocation5 + $0x1d0] sm:$0xf] }
  0x67   :  { %1246 = vmatpush.bf16.msra.mxu0 %v2047_v9  ;;  %v2284_v9 = vld [vmem:[#allocation5 + $0x3cc] sm:$0xf0]  ;;  %v2578_v17 = vld [vmem:[#allocation5 + $0x1d8] sm:$0xf0]  ;;  %v2026_v30 = vld [vmem:[#allocation5 + $0x1b8] sm:$0xf] }
  0x68   :  { %1260 = vmatpush.bf16.msra.mxu1 %v2143_v10  ;;  %v2191_v10 = vor.u32 %v2615_v60, %v2188_v61  ;;  %v1942_v60 = vld [vmem:[#allocation5 + $0x110] sm:$0xf]  ;;  %v2554_v61 = vld [vmem:[#allocation5 + $0x118] sm:$0xf0]  ;;  %v2039_v26 = vor.u32 %v2578_v17, %v2038_v16  ;;  %v2575_v31 = vld [vmem:[#allocation5 + $0x1c0] sm:$0xf0] }
  0x69   :  { %1287 = vmatpush.bf16.msrb.mxu2 %v2347_v8  ;;  %v2639_v8 = vld [vmem:[#allocation5 + $0x3c4] sm:$0xf]  ;;  %v1943_v5 = vor.u32 %v2554_v61, %v1942_v60  ;;  %v2638_v39 = vld [vmem:[#allocation5 + $0x3b8] sm:$0xf0]  ;;  %v2027_v43 = vor.u32 %v2575_v31, %v2026_v30  ;;  %v2014_v46 = vld [vmem:[#allocation5 + $0x1a0] sm:$0xf] }
  0x6a   :  { %1274 = vmatpush.bf16.msra.mxu3 %v2239_v15  ;;  %v1991_v15 = vor.u32 %v2566_v1, %v1990_v0  ;;  %v2287_v19 = vor.u32 %v2639_v8, %v2284_v9  ;;  %v1834_v0 = vld [vmem:[#allocation5 + $0x38] sm:$0xf]  ;;  %v2602_v8 = vld [vmem:[#allocation5 + $0x298] sm:$0xf0]  ;;  %v2572_v47 = vld [vmem:[#allocation5 + $0x1a8] sm:$0xf0] }
  0x6b   :  { %1247 = vmatpush.bf16.msra.mxu0 %v2035_v23  ;;  %v2086_v23 = vld [vmem:[#allocation5 + $0x230] sm:$0xf]  ;;  %v1930_v9 = vld [vmem:[#allocation5 + $0xf8] sm:$0xf]  ;;  %v2098_v51 = vld [vmem:[#allocation5 + $0x248] sm:$0xf] }
  0x6c   :  { %1261 = vmatpush.bf16.msra.mxu1 %v2131_v24  ;;  %v2590_v24 = vld [vmem:[#allocation5 + $0x238] sm:$0xf0]  ;;  %v2002_v61 = vld [vmem:[#allocation5 + $0x188] sm:$0xf]  ;;  %v2653_v16 = vld [vmem:[#allocation5 + $0x430] sm:$0xf0] }
  0x6d   :  { %1288 = vmatpush.bf16.msrb.mxu2 %v2335_v22  ;;  %v2563_v22 = vld [vmem:[#allocation5 + $0x160] sm:$0xf0]  ;;  %v2620_v30 = vld [vmem:[#allocation5 + $0x328] sm:$0xf0]  ;;  %v2302_v31 = vld [vmem:[#allocation5 + $0x3e0] sm:$0xf] }
  0x6e   :  { %1275 = vmatpush.bf16.msra.mxu3 %v2227_v28  ;;  %v1979_v28 = vor.u32 %v2563_v22, %v1978_v21  ;;  %v2122_v21 = vld [vmem:[#allocation5 + $0x278] sm:$0xf]  ;;  %v2599_v22 = vld [vmem:[#allocation5 + $0x280] sm:$0xf0] }
  0x6f   :  { %1248 = vmatpush.bf16.msra.mxu0 %v2023_v35  ;;  %v2074_v35 = vld [vmem:[#allocation5 + $0x218] sm:$0xf]  ;;  %v2123_v29 = vor.u32 %v2599_v22, %v2122_v21  ;;  %v2650_v21 = vld [vmem:[#allocation5 + $0x418] sm:$0xf0] }
  0x70   :  { %1262 = vmatpush.bf16.msra.mxu1 %v2119_v36  ;;  %v2587_v36 = vld [vmem:[#allocation5 + $0x220] sm:$0xf0] }
  0x71   :  { %1289 = vmatpush.bf16.msrb.mxu2 %v2323_v34  ;;  %v2087_v34 = vor.u32 %v2590_v24, %v2086_v23  ;;  %v1918_v23 = vld [vmem:[#allocation5 + $0xe0] sm:$0xf]  ;;  %v2548_v24 = vld [vmem:[#allocation5 + $0xe8] sm:$0xf0] }
  0x72   :  { %1276 = vmatpush.bf16.msra.mxu3 %v2215_v41  ;;  %v1967_v41 = vor.u32 %v2560_v33, %v1966_v32  ;;  %v1919_v32 = vor.u32 %v2548_v24, %v1918_v23  ;;  %v1906_v33 = vld [vmem:[#allocation5 + $0xc8] sm:$0xf]  ;;  %v2218_v24 = vld [vmem:[#allocation5 + $0x338] sm:$0xf] }
  0x73   :  { %1249 = vmatpush.bf16.msra.mxu0 %v2011_v53  ;;  %v1846_v53 = vld [vmem:[#allocation5 + $0x50] sm:$0xf] }
  0x74   :  { %1263 = vmatpush.bf16.msra.mxu1 %v2107_v55  ;;  %v2159_v55 = vor.u32 %v2608_v45, %v2158_v44  ;;  %v1847_v63 = vor.u32 %v2530_v57, %v1846_v53  ;;  %v2362_v57 = vld [vmem:[#allocation5 + $0x458] sm:$0xf] }
  0x75   :  { %1290 = vmatpush.bf16.msrb.mxu2 %v2311_v48  ;;  %v2075_v48 = vor.u32 %v2587_v36, %v2074_v35  ;;  %v2596_v35 = vld [vmem:[#allocation5 + $0x268] sm:$0xf0]  ;;  %v2545_v36 = vld [vmem:[#allocation5 + $0xd0] sm:$0xf0] }
  0x76   :  { %1277 = vmatpush.bf16.msra.mxu3 %v2203_v59  ;;  %v2605_v59 = vld [vmem:[#allocation5 + $0x2b0] sm:$0xf0] }
  0x77   :  { %1250 = vmatpush.bf16.msra.mxu0 %v1999_v6  ;;  %v2147_v1 = vor.u32 %v2605_v59, %v2146_v58  ;;  %v2527_v6 = vld [vmem:[#allocation5 + $0x40] sm:$0xf0]  ;;  %v2015_v59 = vor.u32 %v2572_v47, %v2014_v46 }
  0x78   :  { %1264 = vmatpush.bf16.msra.mxu1 %v2095_v7  ;;  %v2134_v7 = vld [vmem:[#allocation5 + $0x290] sm:$0xf]  ;;  %v1835_v12 = vor.u32 %v2527_v6, %v1834_v0  ;;  %v2659_v58 = vld [vmem:[#allocation5 + $0x460] sm:$0xf0]  ;;  %v2386_v0 = vld [vmem:[#allocation5 + $0x488] sm:$0xf] }
  0x79   :  { %1291 = vmatpush.bf16.msrb.mxu2 %v2299_v3  ;;  %v2050_v3 = vld [vmem:[#allocation5 + $0x1e8] sm:$0xf]  ;;  %v2350_v6 = vld [vmem:[#allocation5 + $0x440] sm:$0xf] }
  0x7a   :  { %1278 = vmatpush.bf16.msra.mxu3 %v2191_v10  ;;  %1251 = vmatmul.bf16.vlgmr.msra.gmra.mxu0 %v2974_v54  ;;  %v2551_v10 = vld [vmem:[#allocation5 + $0x100] sm:$0xf0] }
  0x7b   :  { %1306 = vmatpush.bf16.msrb.mxu0 %v2383_v18  ;;  %1265 = vmatmul.bf16.vlgmr.msra.gmra.mxu1 %v2982_v20  ;;  %v1931_v18 = vor.u32 %v2551_v10, %v1930_v9 }
  0x7c   :  { %1313 = vmatpush.bf16.msrb.mxu1 %v1895_v11  ;;  %v2051_v11 = vor.u32 %v2581_v4, %v2050_v3  ;;  %v2363_v3 = vor.u32 %v2659_v58, %v2362_v57  ;;  %v2254_v4 = vld [vmem:[#allocation5 + $0x380] sm:$0xf]  ;;  %v2668_v58 = vld [vmem:[#allocation8 + $0x10] sm:$0xff] }
  0x7d   :  { %1292 = vmatpush.bf16.msrb.mxu2 %v2287_v19  ;;  %1279 = vmatmul.bf16.vlgmr.msra.gmra.mxu3 %v2990_v37  ;;  %v2524_v19 = vld [vmem:[#allocation5 + $0x28] sm:$0xf0] }
  0x7e   :  { %1327 = vmatpush.bf16.msrb.mxu3 %v1991_v15  ;;  %v2135_v15 = vor.u32 %v2602_v8, %v2134_v7  ;;  %v2656_v7 = vld [vmem:[#allocation5 + $0x448] sm:$0xf0] }
  0x7f   :  { %1341 = vmatpush.bf16.msra.mxu0 %v2087_v34  ;;  %v2110_v34 = vld [vmem:[#allocation5 + $0x260] sm:$0xf] }
  0x80   :  { %1314 = vmatpush.bf16.msrb.mxu1 %v1883_v25  ;;  %1293 = vmatmul.bf16.vlgmr.msrb.gmra.mxu2 %v2992_v42  ;;  %v1810_v25 = vld [vmem:[#allocation5 + $0x8] sm:$0xf]  ;;  %v2111_v45 = vor.u32 %v2596_v35, %v2110_v34  ;;  %v2617_v35 = vld [vmem:[#allocation5 + $0x310] sm:$0xf0] }
  0x81   :  { %1355 = vmatpush.bf16.msra.mxu2 %v2183_v27  ;;  %v1823_v27 = vor.u32 %v2524_v19, %v1822_v14  ;;  %v2629_v14 = vld [vmem:[#allocation5 + $0x370] sm:$0xf0]  ;;  %v2326_v19 = vld [vmem:[#allocation5 + $0x410] sm:$0xf]  ;;  %v2194_v34 = vld [vmem:[#allocation5 + $0x308] sm:$0xf] }
  0x82   :  { %1328 = vmatpush.bf16.msrb.mxu3 %v1979_v28  ;;  %v2521_v28 = vld [vmem:[#allocation5 + $0x10] sm:$0xf0]  ;;  %v2327_v23 = vor.u32 %v2650_v21, %v2326_v19 }
  0x83   :  { %1342 = vmatpush.bf16.msra.mxu0 %v2075_v48  ;;  %v1811_v44 = vor.u32 %v2521_v28, %v1810_v25  ;;  %v1907_v48 = vor.u32 %v2545_v36, %v1906_v33  ;;  %v2314_v25 = vld [vmem:[#allocation5 + $0x3f8] sm:$0xf]  ;;  %v2290_v36 = vld [vmem:[#allocation5 + $0x3c8] sm:$0xf] }
  0x84   :  { %1315 = vmatpush.bf16.msrb.mxu1 %v1871_v38  ;;  %v2278_v38 = vld [vmem:[#allocation5 + $0x3b0] sm:$0xf] }
  0x85   :  { %1356 = vmatpush.bf16.msra.mxu2 %v2171_v40  ;;  %v2374_v40 = vld [vmem:[#allocation5 + $0x470] sm:$0xf]  ;;  %v2279_v49 = vor.u32 %v2638_v39, %v2278_v38  ;;  %v2641_v38 = vld [vmem:[#allocation5 + $0x3d0] sm:$0xf0]  ;;  %v2195_v39 = vor.u32 %v2617_v35, %v2194_v34 }
  0x86   :  { %1329 = vmatpush.bf16.msrb.mxu3 %v1967_v41  ;;  %v2662_v41 = vld [vmem:[#allocation5 + $0x478] sm:$0xf0]  ;;  %v2677_v35 = vld [vmem:[#allocation8 + $0x58] sm:$0xff] }
  0x87   :  { %1343 = vmatpush.bf16.msra.mxu0 %v2063_v62  ;;  %v2375_v53 = vor.u32 %v2662_v41, %v2374_v40  ;;  %v2569_v62 = vld [vmem:[#allocation5 + $0x190] sm:$0xf0]  ;;  %v2291_v40 = vor.u32 %v2641_v38, %v2290_v36 }
  0x88   :  { %1316 = vmatpush.bf16.msrb.mxu1 %v1859_v52  ;;  %v2593_v52 = vld [vmem:[#allocation5 + $0x250] sm:$0xf0]  ;;  %v2003_v8 = vor.u32 %v2569_v62, %v2002_v61  ;;  %v2667_v61 = vld [vmem:[#allocation8 + $0x8] sm:$0xff] }
  0x89   :  { %1357 = vmatpush.bf16.msra.mxu2 %v2159_v55  ;;  %v2266_v55 = vld [vmem:[#allocation5 + $0x398] sm:$0xf]  ;;  %v2099_v60 = vor.u32 %v2593_v52, %v2098_v51  ;;  %v2670_v51 = vld [vmem:[#allocation8 + $0x20] sm:$0xff] }
  0x8a   :  { %1330 = vmatpush.bf16.msrb.mxu3 %v1955_v56  ;;  %2389 = vmatmul.msk.bf16.vlgmr.msrb.gmra.mxu0 %vm1113_vm0, %v2986_v50  ;;  %v2635_v56 = vld [vmem:[#allocation5 + $0x3a0] sm:$0xf0]  ;;  %v2673_v41 = vld [vmem:[#allocation8 + $0x38] sm:$0xff] }
  0x8b   :  { %1344 = vmatpush.bf16.msra.mxu0 %v2051_v11  ;;  %v2351_v11 = vor.u32 %v2656_v7, %v2350_v6 }
  0x8c   :  { %1317 = vmatpush.bf16.msrb.mxu1 %v1847_v63  ;;  %v2267_v63 = vor.u32 %v2635_v56, %v2266_v55 }
  0x8d   :  { %1358 = vmatpush.bf16.msra.mxu2 %v2147_v1  ;;  %v2665_v1 = vld [vmem:[#allocation5 + $0x490] sm:$0xf0] }
  0x8e   :  { %1331 = vmatpush.bf16.msrb.mxu3 %v1943_v5  ;;  %v2632_v5 = vld [vmem:[#allocation5 + $0x388] sm:$0xf0]  ;;  %v2387_v9 = vor.u32 %v2665_v1, %v2386_v0 }
  0x8f   :  { %1345 = vmatpush.bf16.msra.mxu0 %v2039_v26  ;;  %v2255_v10 = vor.u32 %v2632_v5, %v2254_v4  ;;  %v2647_v26 = vld [vmem:[#allocation5 + $0x400] sm:$0xf0]  ;;  %v2666_v4 = vld [vmem:[#allocation8] sm:$0xff] }
  0x90   :  { %1318 = vmatpush.bf16.msrb.mxu1 %v1835_v12  ;;  %v2242_v12 = vld [vmem:[#allocation5 + $0x368] sm:$0xf]  ;;  %v2315_v28 = vor.u32 %v2647_v26, %v2314_v25 }
  0x91   :  { %1359 = vmatpush.bf16.msra.mxu2 %v2135_v15  ;;  %v2338_v15 = vld [vmem:[#allocation5 + $0x428] sm:$0xf]  ;;  %v2243_v17 = vor.u32 %v2629_v14, %v2242_v12 }
  0x92   :  { %1332 = vmatpush.bf16.msrb.mxu3 %v1931_v18  ;;  %v2626_v18 = vld [vmem:[#allocation5 + $0x358] sm:$0xf0] }
  0x93   :  { %1346 = vmatpush.bf16.msra.mxu0 %v2027_v43  ;;  %v3012_v43 = vld [vmem:[#allocation7] sm:$0x7] }
  0x94   :  { %1319 = vmatpush.bf16.msrb.mxu1 %v1823_v27  ;;  %v323_v47 = vperm.slane %v3012_v43, 0 }
  0x95   :  { %1360 = vmatpush.bf16.msra.mxu2 %v2123_v29  ;;  %v2206_v29 = vld [vmem:[#allocation5 + $0x320] sm:$0xf] }
  0x96   :  { %1333 = vmatpush.bf16.msrb.mxu3 %v1919_v32  ;;  %v2207_v32 = vor.u32 %v2620_v30, %v2206_v29 }
  0x97   :  { %1347 = vmatpush.bf16.msra.mxu0 %v2015_v59 }
  0x98   :  { %1320 = vmatpush.bf16.msrb.mxu1 %v1811_v44  ;;  %v2672_v44 = vld [vmem:[#allocation8 + $0x30] sm:$0xff] }
  0x99   :  { %1361 = vmatpush.bf16.msra.mxu2 %v2111_v45 }
  0x9a   :  { %1334 = vmatpush.bf16.msrb.mxu3 %v1907_v48 }
  0x9b   :  { %1321 = vmatmul.bf16.vlgmr.msrb.gmra.mxu1 %v2976_v2  ;;  %1348 = vmatpush.bf16.msra.mxu0 %v2003_v8  ;;  %v2339_v2 = vor.u32 %v2653_v16, %v2338_v15 }
  0x9c   :  { %1369 = vmatpush.bf16.msra.mxu1 %v2279_v49  ;;  %v2671_v49 = vld [vmem:[#allocation8 + $0x28] sm:$0xff] }
  0x9d   :  { %1335 = vmatmul.bf16.vlgmr.msrb.gmra.mxu3 %v2980_v13  ;;  %1362 = vmatpush.bf16.msra.mxu2 %v2099_v60  ;;  %v2230_v13 = vld [vmem:[#allocation5 + $0x350] sm:$0xf] }
  0x9e   :  { %1383 = vmatpush.bf16.msra.mxu3 %v2375_v53  ;;  %1349 = vmatmul.bf16.vlgmr.msra.gmra.mxu0 %v2974_v54  ;;  %v2231_v22 = vor.u32 %v2626_v18, %v2230_v13  ;;  %v2644_v54 = vld [vmem:[#allocation5 + $0x3e8] sm:$0xf0]  ;;  %v2681_v18 = vld [vmem:[#allocation8 + $0x78] sm:$0xff] }
  0x9f   :  { %1404 = vmatpush.bf16.msrb.mxu0 %v2387_v9  ;;  %v2303_v33 = vor.u32 %v2644_v54, %v2302_v31  ;;  %v2678_v54 = vld [vmem:[#allocation8 + $0x60] sm:$0xff] }
  0xa0   :  { %1370 = vmatpush.bf16.msra.mxu1 %v2267_v63  ;;  %1363 = vmatmul.bf16.vlgmr.msra.gmra.mxu2 %v2982_v20  ;;  %v2623_v20 = vld [vmem:[#allocation5 + $0x340] sm:$0xf0] }
  0xa1   :  { %v2219_v27 = vor.u32 %v2623_v20, %v2218_v24  ;;  %1640 = vmatpush.bf16.msrb.mxu2 %v2673_v41 }
  0xa2   :  { %1384 = vmatpush.bf16.msra.mxu3 %v2363_v3 }
  0xa3   :  { %1654 = vmatpush.bf16.msra.mxu0 %v2681_v18  ;;  %v2686_v18 = vld [vmem:[#allocation8 + $0xa0] sm:$0xff] }
  0xa4   :  { %1371 = vmatpush.bf16.msra.mxu1 %v2255_v10 }
  0xa5   :  { %1641 = vmatpush.bf16.msrb.mxu2 %v2672_v44 }
  0xa6   :  { %1385 = vmatpush.bf16.msra.mxu3 %v2351_v11 }
  0xa8   :  { %1372 = vmatpush.bf16.msra.mxu1 %v2243_v17 }
  0xa9   :  { %1642 = vmatpush.bf16.msrb.mxu2 %v2671_v49 }
  0xaa   :  { %1386 = vmatpush.bf16.msra.mxu3 %v2339_v2 }
  0xac   :  { %1373 = vmatpush.bf16.msra.mxu1 %v2231_v22  ;;  %v324_v22 = vperm.slane %v3012_v43, 1 }
  0xad   :  { %1643 = vmatpush.bf16.msrb.mxu2 %v2670_v51 }
  0xae   :  { %1387 = vmatpush.bf16.msra.mxu3 %v2327_v23  ;;  %2390 = vmatmul.msk.bf16.vlgmr.msrb.gmra.mxu0 %vm1113_vm0, %v2986_v50  ;;  %v2680_v23 = vld [vmem:[#allocation8 + $0x70] sm:$0xff] }
  0xaf   :  { %1655 = vmatpush.bf16.msra.mxu0 %v2680_v23 }
  0xb0   :  { %1374 = vmatpush.bf16.msra.mxu1 %v2219_v27  ;;  %v2679_v27 = vld [vmem:[#allocation8 + $0x68] sm:$0xff] }
  0xb2   :  { %1388 = vmatpush.bf16.msra.mxu3 %v2315_v28 }
  0xb3   :  { %1656 = vmatpush.bf16.msra.mxu0 %v2679_v27 }
  0xb4   :  { %1375 = vmatpush.bf16.msra.mxu1 %v2207_v32 }
  0xb6   :  { %1389 = vmatpush.bf16.msra.mxu3 %v2303_v33 }
  0xb7   :  { %v1126_v45 = vpop.f32.mrf.mxu0  ;;  %1657 = vmatpush.bf16.msra.mxu0 %v2678_v54 }
  0xb8   :  { %1376 = vmatpush.bf16.msra.mxu1 %v2195_v39  ;;  %v1140_v48 = vpop.f32.mrf.mxu1  ;;  %v1127_v50 = vadd.f32 %v1126_v45, %v323_v47  ;;  %v2676_v45 = vld [vmem:[#allocation8 + $0x50] sm:$0xff] }
  0xba   :  { %1390 = vmatpush.bf16.msra.mxu3 %v2291_v40  ;;  %v1141_v52 = vadd.f32 %v1140_v48, %v1127_v50  ;;  %v2675_v48 = vld [vmem:[#allocation8 + $0x48] sm:$0xff] }
  0xbb   :  { %1377 = vmatmul.bf16.vlgmr.msra.gmra.mxu1 %v2990_v37  ;;  %1658 = vmatpush.bf16.msra.mxu0 %v2677_v35 }
  0xbd   :  { %1391 = vmatmul.bf16.vlgmr.msra.gmra.mxu3 %v2992_v42  ;;  %v2669_v42 = vld [vmem:[#allocation8 + $0x18] sm:$0xff] }
  0xbe   :  { %1644 = vmatpush.bf16.msrb.mxu2 %v2669_v42 }
  0xbf   :  { %v1154_v46 = vpop.f32.mrf.mxu2  ;;  %v1128_v37 = vpop.f32.mrf.mxu0  ;;  %1659 = vmatpush.bf16.msra.mxu0 %v2676_v45 }
  0xc0   :  { %v1142_v55 = vpop.f32.mrf.mxu1  ;;  %v1155_v56 = vadd.f32 %v1154_v46, %v1141_v52  ;;  %v1168_v57 = vpop.f32.mrf.mxu3  ;;  %v1129_v59 = vadd.f32 %v1128_v37, %v323_v47  ;;  %v2674_v52 = vld [vmem:[#allocation8 + $0x40] sm:$0xff] }
  0xc2   :  { %1645 = vmatpush.bf16.msrb.mxu2 %v2668_v58  ;;  %v1169_v60 = vadd.f32 %v1168_v57, %v1155_v56  ;;  %v1143_v62 = vadd.f32 %v1142_v55, %v1129_v59 }
  0xc3   :  { %1660 = vmatpush.bf16.msra.mxu0 %v2675_v48 }
  0xc6   :  { %1646 = vmatpush.bf16.msrb.mxu2 %v2667_v61 }
  0xc7   :  { %v1156_v53 = vpop.f32.mrf.mxu2  ;;  %1661 = vmatpush.bf16.msra.mxu0 %v2674_v52 }
  0xc8   :  { %v1157_v5 = vadd.f32 %v1156_v53, %v1143_v62  ;;  %v1170_v7 = vpop.f32.mrf.mxu3 }
  0xca   :  { %1647 = vmatpush.bf16.msrb.mxu2 %v2666_v4  ;;  %v1171_v9 = vadd.f32 %v1170_v7, %v1157_v5  ;;  %v2689_v7 = vld [vmem:[#allocation8 + $0xb8] sm:$0xff] }
  0xcb   :  { %1668 = vmatpush.bf16.msrb.mxu1 %v2689_v7 }
  0xcf   :  { %v1210_v0 = vpop.f32.mrf.mxu2 }
  0xd7   :  { %v1182_v63 = vpop.f32.mrf.mxu0  ;;  %v1212_v16 = vpop.f32.mrf.mxu2 }
  0xd8   :  { %v1183_v1 = vadd.f32 %v1182_v63, %v1169_v60  ;;  %v1196_v3 = vpop.f32.mrf.mxu1 }
  0xda   :  { %v1197_v6 = vadd.f32 %v1196_v3, %v1183_v1 }
  0xdc   :  { %v1211_v8 = vadd.f32 %v1210_v0, %v1197_v6 }
  0xde   :  { %v1411_v10 = vsub.f32 0.0, %v1211_v8 }
  0xdf   :  { %v1184_v11 = vpop.f32.mrf.mxu0 }
  0xe0   :  { %v1185_v12 = vadd.f32 %v1184_v11, %v1171_v9  ;;  %v1198_v14 = vpop.f32.mrf.mxu1  ;;  %v1417_v15 = vmul.f32 1.442695, %v1411_v10  ;;  %v1224_v21 = vpop.f32.mrf.mxu3  ;;  %v2688_v10 = vld [vmem:[#allocation8 + $0xb0] sm:$0xff] }
  0xe1   :  { %v1225_v26 = vadd.f32 %v1224_v21, %v324_v22  ;;  %1669 = vmatpush.bf16.msrb.mxu1 %v2688_v10 }
  0xe2   :  { %v1199_v17 = vadd.f32 %v1198_v14, %v1185_v12  ;;  %2717 = vpow2.f32 %v1417_v15  ;;  %v2687_v12 = vld [vmem:[#allocation8 + $0xa8] sm:$0xff] }
  0xe3   :  { %v1238_v20 = vpop.f32.mrf.mxu2 }
  0xe4   :  { %v1213_v2 = vadd.f32 %v1212_v16, %v1199_v17  ;;  %v1239_v30 = vadd.f32 %v1238_v20, %v1225_v26  ;;  %v325_v17 = vperm.slane %v3012_v43, 2  ;;  %v2684_v20 = vld [vmem:[#allocation8 + $0x90] sm:$0xff]  ;;  %v2682_v43 = vld [vmem:[#allocation8 + $0x80] sm:$0xff] }
  0xe5   :  { %1670 = vmatpush.bf16.msrb.mxu1 %v2687_v12 }
  0xe6   :  { %v1414_v13 = vsub.f32 0.0, %v1213_v2 }
  0xe8   :  { %v1423_v19 = vmul.f32 1.442695, %v1414_v13  ;;  %v2718_v24 = vpop.eup %2717  ;;  %v1226_v31 = vpop.f32.mrf.mxu3 }
  0xe9   :  { %v1429_v25 = vadd.f32 1.0, %v2718_v24  ;;  %v1227_v40 = vadd.f32 %v1226_v31, %v324_v22  ;;  %1671 = vmatpush.bf16.msrb.mxu1 %v2686_v18  ;;  %v2685_v22 = vld [vmem:[#allocation8 + $0x98] sm:$0xff] }
  0xea   :  { %2719 = vpow2.f32 %v1423_v19 }
  0xeb   :  { %2721 = vrcp.f32 %v1429_v25  ;;  %v1240_v33 = vpop.f32.mrf.mxu2 }
  0xec   :  { %v1241_v49 = vadd.f32 %v1240_v33, %v1227_v40 }
  0xed   :  { %1672 = vmatpush.bf16.msrb.mxu1 %v2685_v22 }
  0xf0   :  { %v2720_v28 = vpop.eup %2719 }
  0xf1   :  { %v1432_v29 = vadd.f32 1.0, %v2720_v28  ;;  %v2722_v36 = vpop.eup %2721  ;;  %1673 = vmatpush.bf16.msrb.mxu1 %v2684_v20 }
  0xf3   :  { %2723 = vrcp.f32 %v1432_v29 }
  0xf7   :  { %v1252_v32 = vpop.f32.mrf.mxu0 }
  0xf8   :  { %v1253_v34 = vadd.f32 %v1252_v32, %v1239_v30  ;;  %v1266_v39 = vpop.f32.mrf.mxu1  ;;  %v2683_v30 = vld [vmem:[#allocation8 + $0x88] sm:$0xff] }
  0xf9   :  { %v2724_v38 = vpop.eup %2723  ;;  %1674 = vmatpush.bf16.msrb.mxu1 %v2683_v30 }
  0xfa   :  { %v1267_v41 = vadd.f32 %v1266_v39, %v1253_v34  ;;  %v1441_v44 = vpack.c.bf16 %v2724_v38, %v2722_v36 }
  0xfc   :  { %1648 = vmatmul.bf16.vlgmr.msrb.gmra.mxu2 %v1441_v44 }
  0xfd   :  { %1675 = vmatpush.bf16.msrb.mxu1 %v2682_v43 }
  0xff   :  { %v1254_v47 = vpop.f32.mrf.mxu0 }
 0x100   :  { %v1280_v46 = vpop.f32.mrf.mxu3  ;;  %v1255_v37 = vadd.f32 %v1254_v47, %v1241_v49  ;;  %v1268_v42 = vpop.f32.mrf.mxu1 }
 0x101   :  { %v1281_v50 = vadd.f32 %v1280_v46, %v1267_v41 }
 0x102   :  { %v1269_v57 = vadd.f32 %v1268_v42, %v1255_v37 }
 0x103   :  { %v1294_v51 = vpop.f32.mrf.mxu2 }
 0x104   :  { %v1295_v53 = vadd.f32 %v1294_v51, %v1281_v50 }
 0x107   :  { %v1308_v56 = vpop.f32.mrf.mxu0 }
 0x108   :  { %v1282_v55 = vpop.f32.mrf.mxu3  ;;  %v1309_v58 = vadd.f32 %v1308_v56, %v1295_v53 }
 0x109   :  { %v1283_v59 = vadd.f32 %v1282_v55, %v1269_v57 }
 0x10a   :  { %v1412_v60 = vsub.f32 0.0, %v1309_v58 }
 0x10b   :  { %v1296_v61 = vpop.f32.mrf.mxu2 }
 0x10c   :  { %v1419_v62 = vmul.f32 1.442695, %v1412_v60  ;;  %v1297_v63 = vadd.f32 %v1296_v61, %v1283_v59  ;;  %v2697_v59 = vld [vmem:[#allocation10 + $0x38] sm:$0xff]  ;;  %v2696_v60 = vld [vmem:[#allocation10 + $0x30] sm:$0xff]  ;;  %v2695_v61 = vld [vmem:[#allocation10 + $0x28] sm:$0xff] }
 0x10d   :  { %1761 = vmatpush.bf16.msrb.mxu3 %v2697_v59 }
 0x10e   :  { %2725 = vpow2.f32 %v1419_v62  ;;  %v2694_v62 = vld [vmem:[#allocation10 + $0x20] sm:$0xff] }
 0x10f   :  { %v1310_v0 = vpop.f32.mrf.mxu0 }
 0x110   :  { %v1311_v1 = vadd.f32 %v1310_v0, %v1297_v63  ;;  %v2693_v63 = vld [vmem:[#allocation10 + $0x18] sm:$0xff]  ;;  %v2692_v0 = vld [vmem:[#allocation10 + $0x10] sm:$0xff] }
 0x111   :  { %1762 = vmatpush.bf16.msrb.mxu3 %v2696_v60 }
 0x112   :  { %v1415_v3 = vsub.f32 0.0, %v1311_v1 }
 0x114   :  { %v1425_v4 = vmul.f32 1.442695, %v1415_v3  ;;  %v2726_v5 = vpop.eup %2725  ;;  %v2691_v3 = vld [vmem:[#allocation10 + $0x8] sm:$0xff] }
 0x115   :  { %v1430_v6 = vadd.f32 1.0, %v2726_v5  ;;  %1763 = vmatpush.bf16.msrb.mxu3 %v2695_v61 }
 0x116   :  { %2727 = vpow2.f32 %v1425_v4  ;;  %v2715_v4 = vld [vmem:[%s3033_s4] ss:$0 sm:$0xff] }
 0x117   :  { %2729 = vrcp.f32 %v1430_v6  ;;  %v2690_v6 = vld [vmem:[#allocation10] sm:$0xff] }
 0x118   :  { %v1322_v11 = vpop.f32.mrf.mxu1 }
 0x119   :  { %v1323_v19 = vadd.f32 %v1322_v11, %v325_v17  ;;  %1764 = vmatpush.bf16.msrb.mxu3 %v2694_v62 }
 0x11b   :  { %v1350_v15 = vpop.f32.mrf.mxu0 }
 0x11c   :  { %v2728_v8 = vpop.eup %2727 }
 0x11d   :  { %v1433_v9 = vadd.f32 1.0, %v2728_v8  ;;  %v2730_v14 = vpop.eup %2729  ;;  %1765 = vmatpush.bf16.msrb.mxu3 %v2693_v63 }
 0x11f   :  { %2731 = vrcp.f32 %v1433_v9 }
 0x120   :  { %v1336_v2 = vpop.f32.mrf.mxu3  ;;  %v1324_v21 = vpop.f32.mrf.mxu1 }
 0x121   :  { %v1337_v23 = vadd.f32 %v1336_v2, %v1323_v19  ;;  %v1325_v28 = vadd.f32 %v1324_v21, %v325_v17  ;;  %1766 = vmatpush.bf16.msrb.mxu3 %v2692_v0 }
 0x123   :  { %v1352_v24 = vpop.f32.mrf.mxu0  ;;  %v1364_v25 = vpop.f32.mrf.mxu2  ;;  %v1351_v27 = vadd.f32 %v1350_v15, %v1337_v23 }
 0x125   :  { %v2732_v16 = vpop.eup %2731  ;;  %v1365_v31 = vadd.f32 %v1364_v25, %v1351_v27  ;;  %1767 = vmatpush.bf16.msrb.mxu3 %v2691_v3 }
 0x126   :  { %v1442_v13 = vpack.c.bf16 %v2732_v16, %v2730_v14 }
 0x128   :  { %1662 = vmatmul.bf16.vlgmr.msra.gmra.mxu0 %v1442_v13  ;;  %v1338_v26 = vpop.f32.mrf.mxu3 }
 0x129   :  { %v1339_v54 = vadd.f32 %v1338_v26, %v1325_v28  ;;  %1768 = vmatpush.bf16.msrb.mxu3 %v2690_v6  ;;  %v2716_v28 = vld [vmem:[%s3035_s6] ss:$0 sm:$0xff] }
 0x12b   :  { %v1406_v33 = vpop.f32.mrf.mxu0  ;;  %v1353_v35 = vadd.f32 %v1352_v24, %v1339_v54  ;;  %v1366_v38 = vpop.f32.mrf.mxu2 }
 0x12d   :  { %v1367_v41 = vadd.f32 %v1366_v38, %v1353_v35 }
 0x133   :  { %v1408_v49 = vpop.f32.mrf.mxu0 }
 0x138   :  { %v1378_v29 = vpop.f32.mrf.mxu1 }
 0x139   :  { %v1379_v32 = vadd.f32 %v1378_v29, %v1365_v31 }
 0x140   :  { %v1392_v34 = vpop.f32.mrf.mxu3  ;;  %v1380_v40 = vpop.f32.mrf.mxu1 }
 0x141   :  { %v1393_v36 = vadd.f32 %v1392_v34, %v1379_v32  ;;  %v1381_v45 = vadd.f32 %v1380_v40, %v1367_v41 }
 0x143   :  { %v1407_v39 = vadd.f32 %v1406_v33, %v1393_v36 }
 0x145   :  { %v1413_v44 = vsub.f32 0.0, %v1407_v39 }
 0x147   :  { %v1421_v46 = vmul.f32 1.442695, %v1413_v44 }
 0x148   :  { %v1394_v47 = vpop.f32.mrf.mxu3 }
 0x149   :  { %v1395_v48 = vadd.f32 %v1394_v47, %v1381_v45  ;;  %2733 = vpow2.f32 %v1421_v46 }
 0x14b   :  { %v1409_v50 = vadd.f32 %v1408_v49, %v1395_v48 }
 0x14d   :  { %v1416_v51 = vsub.f32 0.0, %v1409_v50 }
 0x14f   :  { %v1427_v52 = vmul.f32 1.442695, %v1416_v51  ;;  %v2734_v37 = vpop.eup %2733 }
 0x150   :  { %v1431_v53 = vadd.f32 1.0, %v2734_v37 }
 0x151   :  { %2735 = vpow2.f32 %v1427_v52 }
 0x152   :  { %2737 = vrcp.f32 %v1431_v53 }
 0x157   :  { %v2736_v42 = vpop.eup %2735 }
 0x158   :  { %v1434_v55 = vadd.f32 1.0, %v2736_v42  ;;  %v2738_v56 = vpop.eup %2737 }
 0x15a   :  { %2739 = vrcp.f32 %v1434_v55 }
 0x160   :  { %v2740_v57 = vpop.eup %2739 }
 0x161   :  { %v1443_v58 = vpack.c.bf16 %v2740_v57, %v2738_v56 }
 0x163   :  { %1676 = vmatmul.bf16.vlgmr.msrb.gmra.mxu1 %v1443_v58 }
 0x17f   :  { %v1649_v1 = vpop.f32.mrf.mxu2 }
 0x180   :  { %v1650_v7 = vadd.f32 %v2715_v4, %v1649_v1 }
 0x187   :  { %v1651_v11 = vpop.f32.mrf.mxu2 }
 0x188   :  { %v1652_v15 = vadd.f32 %v2715_v4, %v1651_v11 }
 0x1a5   :  { %v1663_v5 = vpop.f32.mrf.mxu0 }
 0x1a6   :  { %v1664_v8 = vadd.f32 %v1663_v5, %v1650_v7 }
 0x1ad   :  { %v1665_v14 = vpop.f32.mrf.mxu0 }
 0x1ae   :  { %v1666_v17 = vadd.f32 %v1665_v14, %v1652_v15 }
 0x1e0   :  { %v1677_v9 = vpop.f32.mrf.mxu1 }
 0x1e1   :  { %v1678_v10 = vadd.f32 %v1677_v9, %v1664_v8 }
 0x1e3   :  { %v1682_v12 = vsub.f32 0.0, %v1678_v10 }
 0x1e5   :  { %v1684_v16 = vmul.f32 1.442695, %v1682_v12 }
 0x1e7   :  { %2741 = vpow2.f32 %v1684_v16 }
 0x1e8   :  { %v1679_v2 = vpop.f32.mrf.mxu1 }
 0x1e9   :  { %v1680_v13 = vadd.f32 %v1679_v2, %v1666_v17 }
 0x1eb   :  { %v1683_v18 = vsub.f32 0.0, %v1680_v13 }
 0x1ed   :  { %v1686_v19 = vmul.f32 1.442695, %v1683_v18  ;;  %v2742_v21 = vpop.eup %2741 }
 0x1ee   :  { %v1688_v22 = vadd.f32 1.0, %v2742_v21 }
 0x1ef   :  { %2743 = vpow2.f32 %v1686_v19 }
 0x1f0   :  { %2745 = vrcp.f32 %v1688_v22 }
 0x1f5   :  { %v2744_v23 = vpop.eup %2743 }
 0x1f6   :  { %v1689_v24 = vadd.f32 1.0, %v2744_v23  ;;  %v2746_v20 = vpop.eup %2745 }
 0x1f8   :  { %2747 = vrcp.f32 %v1689_v24 }
 0x1fe   :  { %v2748_v25 = vpop.eup %2747 }
 0x1ff   :  { %v1692_v26 = vpack.c.bf16 %v2748_v25, %v2746_v20 }
 0x201   :  { %1769 = vmatmul.bf16.vlgmr.msrb.gmra.mxu3 %v1692_v26 }
 0x284   :  { %v1770_v27 = vpop.f32.mrf.mxu3 }
 0x285   :  { %v1771_v30 = vadd.f32 %v2716_v28, %v1770_v27 }
 0x28c   :  { %v1772_v29 = vpop.f32.mrf.mxu3 }
 0x28d   :  { %v1773_v43 = vadd.f32 %v2716_v28, %v1772_v29 }
 0x28f   :  { %v2701_v31 = vpack.c.bf16 %v1773_v43, %v1771_v30 }
 0x291   :  { %2702 = vst [vmem:[#allocation11] sm:$0xff] %v2701_v31  }
 0x292   :  { %1791 = dma.vmem_to_hbm [thread:$0]  %s1784_s8, 128, %s1786_s11, [#allocation4], %s2905_s13, %s2905_s13, %s2906_s14  }
 0x293   :  { %2899 = dma.done.wait [#allocation4], 128  }
 0x294   :  { %2900 = vsyncadd [#allocation4], 4294967168 }
 0x295   :  { %1796 = vsyncpa [#allocation3], 1 }
 0x296   :  { %1797 = vsyncpa [#allocation6], 1 }
 0x297   :  { %1798 = vsyncpa [#allocation9], 1 }
 0x298   :  { %1799 = vsyncpa [#allocation4], 1 }

</bundles_post_ra>
